<compile_context>
chip_gen: v7x
topology: tpu7x:2x2x1
jax: 0.10.0
libtpu: 0.0.40
codegen_flags: <defaults>
</compile_context>

<pallas_src>
import functools

import jax
import jax.numpy as jnp
from jax.experimental import pallas as pl
from jax.experimental.pallas import tpu as pltpu

HIDDEN = 32            # hidden_size
C1, C2 = 200, 400      # conv1 / conv3 output channels
K1, P1 = 5, 2          # conv1 kernel / padding
K2, P2 = 3, 1          # conv3 kernel / padding
EPS = 1e-5             # BatchNorm eps

C1P = 256              # conv1 channels zero-padded (lane aligned)
C2P = 512              # conv3 channels zero-padded (lane aligned)
TM_MAX = 512           # row tile for the large-M (tiled) path


def _round_up(x, m):
    return (x + m - 1) // m * m


def _tpu_defaults():
    """Generation-aware (n_tile, per-core VMEM capacity bytes)."""
    try:
        kind = jax.devices()[0].device_kind.lower()
    except Exception:
        kind = ""
    narrow_mxu = any(s in kind for s in ("v2", "v3", "v4", "v5 lite", "v5lite", "v5e"))
    n_tile = 128 if narrow_mxu else 256         # 128-wide MXU (v5e-) vs 256-wide (v6e/v7x)
    try:
        vmem_cap = int(pltpu.get_tpu_info().vmem_capacity_bytes)
    except Exception:
        vmem_cap = 64 << 20                     # conservative: v7x per-core VMEM
    return n_tile, vmem_cap


# ----------------------------------------------------------------------------
# Kernels
# ----------------------------------------------------------------------------
def _mm_bn_fused_kernel(lhs_ref, w_ref, g_ref, b_ref, out_ref, *, inv_n, relu):
    """Small-M path: bf16 MXU matmul -> single-pass batch-stat BN (-> ReLU).

    BN statistics are per channel (column) over all rows; channel tiles are
    fully independent, so no cross-tile reduction is needed.  Zero-padded
    lhs rows contribute 0 to sum/sumsq, so inv_n uses the *real* row count.
    """
    acc = jnp.dot(lhs_ref[...], w_ref[...],
                  preferred_element_type=jnp.float32)            # (M, Nt) f32
    s = jnp.sum(acc, axis=0, keepdims=True)                      # (1, Nt)
    sq = jnp.sum(acc * acc, axis=0, keepdims=True)               # (1, Nt)
    mean = s * inv_n
    var = jnp.maximum(sq * inv_n - mean * mean, 0.0)
    scale = g_ref[...] * jax.lax.rsqrt(var + EPS)
    shift = b_ref[...] - mean * scale
    y = acc * scale + shift
    if relu:
        y = jnp.maximum(y, 0.0)
    out_ref[...] = y.astype(out_ref.dtype)


def _mm_stats_kernel(lhs_ref, w_ref, raw_ref, s_ref, sq_ref, s_scr, sq_scr):
    """Large-M path, pass A: row-tiled matmul + per-channel stats accumulation.

    grid = (channel tiles [parallel], M blocks [arbitrary]).  Stats scratch is
    zeroed on the first M block and flushed to the (1, n_tile) outputs on the
    last one; the raw matmul block goes straight to HBM.
    """
    mi = pl.program_id(1)

    @pl.when(mi == 0)
    def _():
        s_scr[...] = jnp.zeros_like(s_scr)
        sq_scr[...] = jnp.zeros_like(sq_scr)

    acc = jnp.dot(lhs_ref[...], w_ref[...],
                  preferred_element_type=jnp.float32)            # (TM, Nt) f32
    raw_ref[...] = acc
    s_scr[...] += jnp.sum(acc, axis=0, keepdims=True)
    sq_scr[...] += jnp.sum(acc * acc, axis=0, keepdims=True)

    @pl.when(mi == pl.num_programs(1) - 1)
    def _():
        s_ref[...] = s_scr[...]
        sq_ref[...] = sq_scr[...]


def _scale_shift_kernel(x_ref, scale_ref, shift_ref, out_ref, *, relu):
    """Large-M path, pass B: elementwise y = x*scale + shift (-> ReLU)."""
    y = x_ref[...] * scale_ref[...] + shift_ref[...]
    if relu:
        y = jnp.maximum(y, 0.0)
    out_ref[...] = y.astype(out_ref.dtype)


# ----------------------------------------------------------------------------
# One conv layer (as im2col matmul) + training-mode BatchNorm
# ----------------------------------------------------------------------------
def _conv_bn_layer(lhs, w, gamma, beta, *, relu, out_dtype, n_tile, vmem_cap,
                   force_tiled=False):
    """(M, K) bf16 @ (K, C) bf16 + per-channel batch-stat BN over the M rows.

    Returns (M, C) in out_dtype.  C must be a multiple of n_tile.  Padded
    channels (zero weights, zero gamma/beta) come out exactly zero.
    """
    m_real, k = lhs.shape
    kw, c = w.shape
    assert k == kw and c % n_tile == 0, (lhs.shape, w.shape, n_tile)
    n_c = c // n_tile
    inv_n = 1.0 / m_real
    out_isize = jnp.dtype(out_dtype).itemsize
    budget = int(min(48 << 20, vmem_cap * 3 // 4))   # never over-ask v7x's 64 MiB/core

    # --- fused single-pass path (whole M resident): small / medium M only ---
    m16 = _round_up(m_real, 16)                       # bf16 sublane packing
    fused_bytes = (2 * (m16 * k * 2 + k * n_tile * 2 + 2 * n_tile * 4
                        + m16 * n_tile * out_isize)   # double-buffered I/O blocks
                   + 3 * m16 * n_tile * 4             # f32 acc / acc^2 / y temporaries
                   + (8 << 20))                       # headroom

    if (not force_tiled) and fused_bytes <= budget:
        lhs_p = jnp.pad(lhs, ((0, m16 - m_real), (0, 0)))
        cost = pl.CostEstimate(
            flops=2 * m16 * k * c, transcendentals=0,
            bytes_accessed=(m16 * k * 2 + k * c * 2 + m16 * c * out_isize + 4 * c * 4))
        out = pl.pallas_call(
            functools.partial(_mm_bn_fused_kernel, inv_n=inv_n, relu=relu),
            out_shape=jax.ShapeDtypeStruct((m16, c), out_dtype),
            grid=(n_c,),
            in_specs=[
                pl.BlockSpec((m16, k), lambda j: (0, 0)),       # lhs: resident
                pl.BlockSpec((k, n_tile), lambda j: (0, j)),    # weight channel tile
                pl.BlockSpec((1, n_tile), lambda j: (0, j)),    # gamma tile
                pl.BlockSpec((1, n_tile), lambda j: (0, j)),    # beta tile
            ],
            out_specs=pl.BlockSpec((m16, n_tile), lambda j: (0, j)),
            compiler_params=pltpu.CompilerParams(
                dimension_semantics=("parallel",),
                vmem_limit_bytes=int(min(budget, max(fused_bytes, 16 << 20)))),
            cost_estimate=cost,
        )(lhs_p, w, gamma, beta)
        return out[:m_real]

    # --- tiled-M two-pass path: matmul + stats, then scale/shift(+ReLU) ---
    tm = min(TM_MAX, m16)
    m_pad = _round_up(m_real, tm)
    n_m = m_pad // tm
    lhs_p = jnp.pad(lhs, ((0, m_pad - m_real), (0, 0)))   # zero rows: stats unaffected

    tiled_bytes = (2 * (tm * k * 2 + k * n_tile * 2 + tm * n_tile * 4 + 4 * n_tile * 4)
                   + 3 * tm * n_tile * 4 + (8 << 20))
    cost_a = pl.CostEstimate(
        flops=2 * m_pad * k * c, transcendentals=0,
        bytes_accessed=(n_c * m_pad * k * 2 + k * c * 2 + m_pad * c * 4 + 2 * c * 4))

    raw, s, sq = pl.pallas_call(
        _mm_stats_kernel,
        out_shape=(jax.ShapeDtypeStruct((m_pad, c), jnp.float32),
                   jax.ShapeDtypeStruct((1, c), jnp.float32),
                   jax.ShapeDtypeStruct((1, c), jnp.float32)),
        grid=(n_c, n_m),
        in_specs=[
            pl.BlockSpec((tm, k), lambda j, i: (i, 0)),
            pl.BlockSpec((k, n_tile), lambda j, i: (0, j)),
        ],
        out_specs=(pl.BlockSpec((tm, n_tile), lambda j, i: (i, j)),
                   pl.BlockSpec((1, n_tile), lambda j, i: (0, j)),
                   pl.BlockSpec((1, n_tile), lambda j, i: (0, j))),
        scratch_shapes=[pltpu.VMEM((1, n_tile), jnp.float32),
                        pltpu.VMEM((1, n_tile), jnp.float32)],
        compiler_params=pltpu.CompilerParams(
            dimension_semantics=("parallel", "arbitrary"),
            vmem_limit_bytes=int(min(budget, max(tiled_bytes, 16 << 20)))),
        cost_estimate=cost_a,
    )(lhs_p, w)

    # Tiny (1, C) per-channel finalize: mean/var -> scale/shift (cheap in XLA).
    mean = s * inv_n
    var = jnp.maximum(sq * inv_n - mean * mean, 0.0)
    scale = gamma * jax.lax.rsqrt(var + EPS)
    shift = beta - mean * scale

    ss_bytes = (2 * (tm * n_tile * 4 + 2 * n_tile * 4 + tm * n_tile * out_isize)
                + tm * n_tile * 4 + (8 << 20))
    out = pl.pallas_call(
        functools.partial(_scale_shift_kernel, relu=relu),
        out_shape=jax.ShapeDtypeStruct((m_pad, c), out_dtype),
        grid=(n_c, n_m),
        in_specs=[
            pl.BlockSpec((tm, n_tile), lambda j, i: (i, j)),
            pl.BlockSpec((1, n_tile), lambda j, i: (0, j)),
            pl.BlockSpec((1, n_tile), lambda j, i: (0, j)),
        ],
        out_specs=pl.BlockSpec((tm, n_tile), lambda j, i: (i, j)),
        compiler_params=pltpu.CompilerParams(
            dimension_semantics=("parallel", "parallel"),
            vmem_limit_bytes=int(min(budget, max(ss_bytes, 16 << 20)))),
    )(raw, scale, shift)
    return out[:m_real]


# ----------------------------------------------------------------------------
# WordCNN forward
# ----------------------------------------------------------------------------
def _pad_cols(x, width):
    return jnp.pad(x, ((0, 0), (0, width - x.shape[-1])))


@functools.partial(jax.jit, static_argnames=("force_tiled",))
def word_cnn(emb, params, force_tiled=False):
    """emb: (B, L, H) f32 -> (B, L, 400) f32 (training-mode BatchNorm)."""
    B, L, H = emb.shape
    M = B * L
    n_tile, vmem_cap = _tpu_defaults()

    # ---- conv1 as one im2col matmul: (B*L, K1*H) @ (K1*H, C1P) ----
    x_pad = jnp.pad(emb, ((0, 0), (P1, P1), (0, 0)))                 # (B, L+4, H)
    x_cols = jnp.concatenate(
        [x_pad[:, t:t + L, :] for t in range(K1)], axis=2)           # (B, L, K1*H)
    x_cols = x_cols.reshape(M, K1 * H).astype(jnp.bfloat16)

    # PyTorch Conv1d weight (out, in, k) -> (k*in, out); zero-pad out channels.
    w1 = params['w1'].transpose(2, 1, 0).reshape(K1 * H, C1)         # (160, 200)
    w1 = _pad_cols(w1, C1P).astype(jnp.bfloat16)
    g1 = _pad_cols(params['g1'][None, :], C1P)
    be1 = _pad_cols(params['be1'][None, :], C1P)
    # Conv bias b1 intentionally unused: cancels in training-mode (batch-stat) BN.

    # Layer-1 intermediate emitted in bf16 (layer 2 consumes bf16 anyway).
    h = _conv_bn_layer(x_cols, w1, g1, be1, relu=True, out_dtype=jnp.bfloat16,
                       n_tile=n_tile, vmem_cap=vmem_cap, force_tiled=force_tiled)

    # ---- conv3 as one im2col matmul, lane-aligned taps over all C1P channels ----
    hp = jnp.pad(h.reshape(B, L, C1P), ((0, 0), (P2, P2), (0, 0)))   # (B, L+2, 256)
    cols3 = jnp.concatenate(
        [hp[:, t:t + L, :] for t in range(K2)], axis=2)              # (B, L, 768)
    cols3 = cols3.reshape(M, K2 * C1P)                               # bf16

    # w3 rows for the zero-padded input channels are zero -> exact.
    w3 = jnp.pad(params['w3'].transpose(2, 1, 0),                    # (K2, C1, C2)
                 ((0, 0), (0, C1P - C1), (0, C2P - C2)))             # (K2, 256, 512)
    w3 = w3.reshape(K2 * C1P, C2P).astype(jnp.bfloat16)              # (768, 512)
    g3 = _pad_cols(params['g3'][None, :], C2P)
    be3 = _pad_cols(params['be3'][None, :], C2P)

    y = _conv_bn_layer(cols3, w3, g3, be3, relu=False, out_dtype=jnp.float32,
                       n_tile=n_tile, vmem_cap=vmem_cap, force_tiled=force_tiled)
    return y.reshape(B, L, C2P)[:, :, :C2]


# ----------------------------------------------------------------------------
# Pure-JAX reference (mirrors the PyTorch forward, training-mode BN, f32)
# ----------------------------------------------------------------------------
def ref_forward(emb, params):
    x = jnp.transpose(emb, (0, 2, 1))                                # (B, H, L)
    y = jax.lax.conv_general_dilated(
        x, params['w1'], (1,), [(P1, P1)],
        dimension_numbers=('NCH', 'OIH', 'NCH'), precision='highest')
    y = y + params['b1'][None, :, None]
    m = jnp.mean(y, axis=(0, 2), keepdims=True)
    v = jnp.mean((y - m) ** 2, axis=(0, 2), keepdims=True)
    y = (y - m) * jax.lax.rsqrt(v + EPS)
    y = y * params['g1'][None, :, None] + params['be1'][None, :, None]
    y = jnp.maximum(y, 0.0)
    z = jax.lax.conv_general_dilated(
        y, params['w3'], (1,), [(P2, P2)],
        dimension_numbers=('NCH', 'OIH', 'NCH'), precision='highest')
    z = z + params['b3'][None, :, None]
    m = jnp.mean(z, axis=(0, 2), keepdims=True)
    v = jnp.mean((z - m) ** 2, axis=(0, 2), keepdims=True)
    z = (z - m) * jax.lax.rsqrt(v + EPS)
    z = z * params['g3'][None, :, None] + params['be3'][None, :, None]
    return jnp.transpose(z, (0, 2, 1))                               # (B, L, 400)


if __name__ == "__main__":
    key = jax.random.PRNGKey(0)
    ks = jax.random.split(key, 10)
    params = {
        'w1': 0.05 * jax.random.normal(ks[1], (C1, HIDDEN, K1), jnp.float32),
        'b1': 0.05 * jax.random.normal(ks[2], (C1,), jnp.float32),
        'g1': 1.0 + 0.1 * jax.random.normal(ks[3], (C1,), jnp.float32),
        'be1': 0.1 * jax.random.normal(ks[4], (C1,), jnp.float32),
        'w3': 0.05 * jax.random.normal(ks[5], (C2, C1, K2), jnp.float32),
        'b3': 0.05 * jax.random.normal(ks[6], (C2,), jnp.float32),
        'g3': 1.0 + 0.1 * jax.random.normal(ks[7], (C2,), jnp.float32),
        'be3': 0.1 * jax.random.normal(ks[8], (C2,), jnp.float32),
    }

    # Small shape (B=2, L=8, H=32): exercises the fused single-pass kernel.
    B, L = 2, 8
    emb = jax.random.normal(ks[0], (B, L, HIDDEN), jnp.float32)
    out = jax.block_until_ready(word_cnn(emb, params))
    ref = jax.block_until_ready(ref_forward(emb, params))
    assert out.shape == (B, L, C2), out.shape
    err = float(jnp.max(jnp.abs(out - ref)))
    # bf16 MXU matmuls + bf16 intermediate vs f32-'highest' reference.
    assert jnp.allclose(out, ref, atol=7e-2, rtol=5e-2), ("fused path", err)

    # Medium shape (B=4, L=384 -> M=1536): exercises the row-tiled two-pass
    # BN path (matmul+stats kernel with scratch accumulation, then the
    # scale/shift kernel) that keeps VMEM bounded at large B*L.
    B2, L2 = 4, 384
    emb2 = jax.random.normal(ks[9], (B2, L2, HIDDEN), jnp.float32)
    out2 = jax.block_until_ready(word_cnn(emb2, params, force_tiled=True))
    ref2 = jax.block_until_ready(ref_forward(emb2, params))
    assert out2.shape == (B2, L2, C2), out2.shape
    err2 = float(jnp.max(jnp.abs(out2 - ref2)))
    assert jnp.allclose(out2, ref2, atol=7e-2, rtol=5e-2), ("tiled path", err2)

    print("KERNEL_OK")
</pallas_src>

<mosaic_0001>
module attributes {stable_mosaic.version = 11 : i64} {
  func.func @_mm_bn_fused_kernel(%arg0: i32, %arg1: memref<16x160xbf16, #tpu.memory_space<vmem>>, %arg2: memref<160x256xbf16, #tpu.memory_space<vmem>>, %arg3: memref<1x256xf32, #tpu.memory_space<vmem>>, %arg4: memref<1x256xf32, #tpu.memory_space<vmem>>, %arg5: memref<16x256xbf16, #tpu.memory_space<vmem>>) attributes {dimension_semantics = [#tpu.dimension_semantics<parallel>], iteration_bounds = array<i64: 1>, scalar_prefetch = 0 : i64, scratch_operands = 0 : i64, tpu.core_type = #tpu.core_type<tc>, window_params = [{pipeline_mode = #tpu.pipeline_mode<synchronous>, transform_indices = @transform_0, window_bounds = array<i64: 16, 160>}, {transform_indices = @transform_1, window_bounds = array<i64: 160, 256>}, {transform_indices = @transform_2, window_bounds = array<i64: 1, 256>}, {transform_indices = @transform_3, window_bounds = array<i64: 1, 256>}, {transform_indices = @transform_4, window_bounds = array<i64: 16, 256>}]} {
    %c0 = arith.constant 0 : index
    %c0_0 = arith.constant 0 : index
    %0 = vector.load %arg1[%c0, %c0_0] : memref<16x160xbf16, #tpu.memory_space<vmem>>, vector<16x160xbf16>
    %c0_1 = arith.constant 0 : index
    %c0_2 = arith.constant 0 : index
    %1 = vector.load %arg2[%c0_1, %c0_2] : memref<160x256xbf16, #tpu.memory_space<vmem>>, vector<160x256xbf16>
    %cst = arith.constant dense<0.000000e+00> : vector<16x256xf32>
    %2 = tpu.matmul %0, %1, %cst {dimension_numbers = #tpu.dot_dimension_numbers<[1], [0], [0], [1], [0, 0, 1, 1], [], []>} : vector<16x160xbf16>, vector<160x256xbf16>, vector<16x256xf32> -> vector<16x256xf32>
    %cst_3 = arith.constant dense<0.000000e+00> : vector<256xf32>
    %3 = vector.multi_reduction <add>, %2, %cst_3 [0] : vector<16x256xf32> to vector<256xf32>
    %4 = vector.shape_cast %3 : vector<256xf32> to vector<1x256xf32>
    %5 = arith.mulf %2, %2 : vector<16x256xf32>
    %cst_4 = arith.constant dense<0.000000e+00> : vector<256xf32>
    %6 = vector.multi_reduction <add>, %5, %cst_4 [0] : vector<16x256xf32> to vector<256xf32>
    %7 = vector.shape_cast %6 : vector<256xf32> to vector<1x256xf32>
    %cst_5 = arith.constant 6.250000e-02 : f32
    %8 = vector.broadcast %cst_5 : f32 to vector<1x256xf32>
    %9 = arith.mulf %4, %8 : vector<1x256xf32>
    %cst_6 = arith.constant 6.250000e-02 : f32
    %10 = vector.broadcast %cst_6 : f32 to vector<1x256xf32>
    %11 = arith.mulf %7, %10 : vector<1x256xf32>
    %12 = arith.mulf %9, %9 : vector<1x256xf32>
    %13 = arith.subf %11, %12 : vector<1x256xf32>
    %cst_7 = arith.constant 0.000000e+00 : f32
    %14 = vector.broadcast %cst_7 : f32 to vector<1x256xf32>
    %15 = arith.maximumf %13, %14 : vector<1x256xf32>
    %c0_8 = arith.constant 0 : index
    %c0_9 = arith.constant 0 : index
    %16 = vector.load %arg3[%c0_8, %c0_9] : memref<1x256xf32, #tpu.memory_space<vmem>>, vector<1x256xf32>
    %cst_10 = arith.constant 9.99999974E-6 : f32
    %17 = vector.broadcast %cst_10 : f32 to vector<1x256xf32>
    %18 = arith.addf %15, %17 : vector<1x256xf32>
    %19 = math.rsqrt %18 : vector<1x256xf32>
    %20 = arith.mulf %16, %19 : vector<1x256xf32>
    %c0_11 = arith.constant 0 : index
    %c0_12 = arith.constant 0 : index
    %21 = vector.load %arg4[%c0_11, %c0_12] : memref<1x256xf32, #tpu.memory_space<vmem>>, vector<1x256xf32>
    %22 = arith.mulf %9, %20 : vector<1x256xf32>
    %23 = arith.subf %21, %22 : vector<1x256xf32>
    %24 = vector.broadcast %20 : vector<1x256xf32> to vector<16x256xf32>
    %25 = arith.mulf %2, %24 : vector<16x256xf32>
    %26 = vector.broadcast %23 : vector<1x256xf32> to vector<16x256xf32>
    %27 = arith.addf %25, %26 : vector<16x256xf32>
    %cst_13 = arith.constant 0.000000e+00 : f32
    %28 = vector.broadcast %cst_13 : f32 to vector<16x256xf32>
    %29 = arith.maximumf %27, %28 : vector<16x256xf32>
    %30 = arith.truncf %29 : vector<16x256xf32> to vector<16x256xbf16>
    %c0_14 = arith.constant 0 : index
    %c0_15 = arith.constant 0 : index
    %31 = vector.load %arg5[%c0_14, %c0_15] : memref<16x256xbf16, #tpu.memory_space<vmem>>, vector<16x256xbf16>
    tpu.vector_store %arg5[%c0_14, %c0_15], %30 {strides = array<i32>} : memref<16x256xbf16, #tpu.memory_space<vmem>>, vector<16x256xbf16>,
    return
  }
  func.func @transform_0(%arg0: i32) -> (i32, i32) {
    %c0_i32 = arith.constant 0 : i32
    %c0_i32_0 = arith.constant 0 : i32
    %c0_i32_1 = arith.constant 0 : i32
    return %c0_i32, %c0_i32_0 : i32, i32
  }
  func.func @transform_1(%arg0: i32) -> (i32, i32) {
    %c0_i32 = arith.constant 0 : i32
    %c0_i32_0 = arith.constant 0 : i32
    return %c0_i32, %arg0 : i32, i32
  }
  func.func @transform_2(%arg0: i32) -> (i32, i32) {
    %c0_i32 = arith.constant 0 : i32
    %c0_i32_0 = arith.constant 0 : i32
    return %c0_i32, %arg0 : i32, i32
  }
  func.func @transform_3(%arg0: i32) -> (i32, i32) {
    %c0_i32 = arith.constant 0 : i32
    %c0_i32_0 = arith.constant 0 : i32
    return %c0_i32, %arg0 : i32, i32
  }
  func.func @transform_4(%arg0: i32) -> (i32, i32) {
    %c0_i32 = arith.constant 0 : i32
    %c0_i32_0 = arith.constant 0 : i32
    return %c0_i32, %arg0 : i32, i32
  }
}

module attributes {stable_mosaic.version = 11 : i64} {
  func.func @_mm_bn_fused_kernel(%arg0: i32, %arg1: memref<16x768xbf16, #tpu.memory_space<vmem>>, %arg2: memref<768x256xbf16, #tpu.memory_space<vmem>>, %arg3: memref<1x256xf32, #tpu.memory_space<vmem>>, %arg4: memref<1x256xf32, #tpu.memory_space<vmem>>, %arg5: memref<16x256xf32, #tpu.memory_space<vmem>>) attributes {dimension_semantics = [#tpu.dimension_semantics<parallel>], iteration_bounds = array<i64: 2>, scalar_prefetch = 0 : i64, scratch_operands = 0 : i64, tpu.core_type = #tpu.core_type<tc>, window_params = [{pipeline_mode = #tpu.pipeline_mode<synchronous>, transform_indices = @transform_0, window_bounds = array<i64: 16, 768>}, {transform_indices = @transform_1, window_bounds = array<i64: 768, 256>}, {transform_indices = @transform_2, window_bounds = array<i64: 1, 256>}, {transform_indices = @transform_3, window_bounds = array<i64: 1, 256>}, {transform_indices = @transform_4, window_bounds = array<i64: 16, 256>}]} {
    %c0 = arith.constant 0 : index
    %c0_0 = arith.constant 0 : index
    %0 = vector.load %arg1[%c0, %c0_0] : memref<16x768xbf16, #tpu.memory_space<vmem>>, vector<16x768xbf16>
    %c0_1 = arith.constant 0 : index
    %c0_2 = arith.constant 0 : index
    %1 = vector.load %arg2[%c0_1, %c0_2] : memref<768x256xbf16, #tpu.memory_space<vmem>>, vector<768x256xbf16>
    %cst = arith.constant dense<0.000000e+00> : vector<16x256xf32>
    %2 = tpu.matmul %0, %1, %cst {dimension_numbers = #tpu.dot_dimension_numbers<[1], [0], [0], [1], [0, 0, 1, 1], [], []>} : vector<16x768xbf16>, vector<768x256xbf16>, vector<16x256xf32> -> vector<16x256xf32>
    %cst_3 = arith.constant dense<0.000000e+00> : vector<256xf32>
    %3 = vector.multi_reduction <add>, %2, %cst_3 [0] : vector<16x256xf32> to vector<256xf32>
    %4 = vector.shape_cast %3 : vector<256xf32> to vector<1x256xf32>
    %5 = arith.mulf %2, %2 : vector<16x256xf32>
    %cst_4 = arith.constant dense<0.000000e+00> : vector<256xf32>
    %6 = vector.multi_reduction <add>, %5, %cst_4 [0] : vector<16x256xf32> to vector<256xf32>
    %7 = vector.shape_cast %6 : vector<256xf32> to vector<1x256xf32>
    %cst_5 = arith.constant 6.250000e-02 : f32
    %8 = vector.broadcast %cst_5 : f32 to vector<1x256xf32>
    %9 = arith.mulf %4, %8 : vector<1x256xf32>
    %cst_6 = arith.constant 6.250000e-02 : f32
    %10 = vector.broadcast %cst_6 : f32 to vector<1x256xf32>
    %11 = arith.mulf %7, %10 : vector<1x256xf32>
    %12 = arith.mulf %9, %9 : vector<1x256xf32>
    %13 = arith.subf %11, %12 : vector<1x256xf32>
    %cst_7 = arith.constant 0.000000e+00 : f32
    %14 = vector.broadcast %cst_7 : f32 to vector<1x256xf32>
    %15 = arith.maximumf %13, %14 : vector<1x256xf32>
    %c0_8 = arith.constant 0 : index
    %c0_9 = arith.constant 0 : index
    %16 = vector.load %arg3[%c0_8, %c0_9] : memref<1x256xf32, #tpu.memory_space<vmem>>, vector<1x256xf32>
    %cst_10 = arith.constant 9.99999974E-6 : f32
    %17 = vector.broadcast %cst_10 : f32 to vector<1x256xf32>
    %18 = arith.addf %15, %17 : vector<1x256xf32>
    %19 = math.rsqrt %18 : vector<1x256xf32>
    %20 = arith.mulf %16, %19 : vector<1x256xf32>
    %c0_11 = arith.constant 0 : index
    %c0_12 = arith.constant 0 : index
    %21 = vector.load %arg4[%c0_11, %c0_12] : memref<1x256xf32, #tpu.memory_space<vmem>>, vector<1x256xf32>
    %22 = arith.mulf %9, %20 : vector<1x256xf32>
    %23 = arith.subf %21, %22 : vector<1x256xf32>
    %24 = vector.broadcast %20 : vector<1x256xf32> to vector<16x256xf32>
    %25 = arith.mulf %2, %24 : vector<16x256xf32>
    %26 = vector.broadcast %23 : vector<1x256xf32> to vector<16x256xf32>
    %27 = arith.addf %25, %26 : vector<16x256xf32>
    %c0_13 = arith.constant 0 : index
    %c0_14 = arith.constant 0 : index
    %28 = vector.load %arg5[%c0_13, %c0_14] : memref<16x256xf32, #tpu.memory_space<vmem>>, vector<16x256xf32>
    tpu.vector_store %arg5[%c0_13, %c0_14], %27 {strides = array<i32>} : memref<16x256xf32, #tpu.memory_space<vmem>>, vector<16x256xf32>,
    return
  }
  func.func @transform_0(%arg0: i32) -> (i32, i32) {
    %c0_i32 = arith.constant 0 : i32
    %c0_i32_0 = arith.constant 0 : i32
    %c0_i32_1 = arith.constant 0 : i32
    return %c0_i32, %c0_i32_0 : i32, i32
  }
  func.func @transform_1(%arg0: i32) -> (i32, i32) {
    %c0_i32 = arith.constant 0 : i32
    %c0_i32_0 = arith.constant 0 : i32
    return %c0_i32, %arg0 : i32, i32
  }
  func.func @transform_2(%arg0: i32) -> (i32, i32) {
    %c0_i32 = arith.constant 0 : i32
    %c0_i32_0 = arith.constant 0 : i32
    return %c0_i32, %arg0 : i32, i32
  }
  func.func @transform_3(%arg0: i32) -> (i32, i32) {
    %c0_i32 = arith.constant 0 : i32
    %c0_i32_0 = arith.constant 0 : i32
    return %c0_i32, %arg0 : i32, i32
  }
  func.func @transform_4(%arg0: i32) -> (i32, i32) {
    %c0_i32 = arith.constant 0 : i32
    %c0_i32_0 = arith.constant 0 : i32
    return %c0_i32, %arg0 : i32, i32
  }
}

</mosaic_0001>

<bundles_post_ra>
// kernel: word_cnn.2
= control target key start
LH: loop header
LB: loop body
LE: loop exit
PB: predicated region body
PF: predicated region fallthrough
CT: control target
= control target key end

     0   :  { %vm149_vm0 = vcmask 261120   ;;  %s529_s1 = inlined_call_operand.vmem [shape: bf16[160,256], index: 1, kind: input, shape index: {}]   ;;  %s530_s0 = inlined_call_operand.vmem [shape: bf16[16,160], index: 0, kind: input, shape index: {}]   ;;  %s531_s2 = inlined_call_operand.vmem [shape: f32[1,256], index: 2, kind: input, shape index: {}]   ;;  %s532_s3 = inlined_call_operand.vmem [shape: f32[1,256], index: 3, kind: input, shape index: {}]   ;;  %s533_s4 = inlined_call_operand.vmem [shape: bf16[16,256], index: 4, kind: output, shape index: {}]  }
   0x1   :  { %v364_v0 = vld [vmem:[%s529_s1 + $0x4] ss:$8 sps:$4 sm:$0xff]   ;;  %v366_v1 = vld [vmem:[%s529_s1] ss:$8 sps:$4 sm:$0xff]   ;;  %v367_v2 = vld [vmem:[%s529_s1 + $0x14] ss:$8 sps:$4 sm:$0xff]  }
   0x2   :  { %153 = vmatprep.subr.bf16.mxu0 %v364_v0  ;;  %v369_v3 = vld [vmem:[%s529_s1 + $0x10] ss:$8 sps:$4 sm:$0xff]   ;;  %v370_v4 = vld [vmem:[%s529_s1 + $0x24] ss:$8 sps:$4 sm:$0xff]   ;;  %v372_v5 = vld [vmem:[%s529_s1 + $0x20] ss:$8 sps:$4 sm:$0xff]  }
   0x3   :  { %154 = vmatpush1.bf16.msra.mxu0 %v366_v1  ;;  %v373_v6 = vld [vmem:[%s529_s1 + $0x34] ss:$8 sps:$4 sm:$0xff]   ;;  %v375_v7 = vld [vmem:[%s529_s1 + $0x30] ss:$8 sps:$4 sm:$0xff]   ;;  %v376_v8 = vld [vmem:[%s529_s1 + $0x44] ss:$8 sps:$4 sm:$0xff]  }
   0x4   :  { %155 = vmatprep.subr.bf16.mxu0 %v367_v2  ;;  %v396_v9 = vld [vmem:[%s530_s0 + $0x4] ss:$8 sps:$4 sm:$0xff]   ;;  %v378_v10 = vld [vmem:[%s529_s1 + $0x40] ss:$8 sps:$4 sm:$0xff]   ;;  %v379_v11 = vld [vmem:[%s529_s1 + $0x54] ss:$8 sps:$4 sm:$0xff]  }
   0x5   :  { %358 = vmatprep.mubr.msk.bf16.mxu0 %vm149_vm0, %v396_v9  ;;  %v381_v12 = vld [vmem:[%s529_s1 + $0x50] ss:$8 sps:$4 sm:$0xff]   ;;  %v382_v13 = vld [vmem:[%s529_s1 + $0x64] ss:$8 sps:$4 sm:$0xff]   ;;  %v384_v14 = vld [vmem:[%s529_s1 + $0x60] ss:$8 sps:$4 sm:$0xff]  }
   0x6   :  { %v385_v15 = vld [vmem:[%s529_s1 + $0x74] ss:$8 sps:$4 sm:$0xff]   ;;  %v387_v16 = vld [vmem:[%s529_s1 + $0x70] ss:$8 sps:$4 sm:$0xff]   ;;  %v388_v17 = vld [vmem:[%s529_s1 + $0x84] ss:$8 sps:$4 sm:$0xff]  }
   0x7   :  { %156 = vmatpush1.bf16.msra.mxu0 %v369_v3  ;;  %v390_v18 = vld [vmem:[%s529_s1 + $0x80] ss:$8 sps:$4 sm:$0xff]   ;;  %v391_v19 = vld [vmem:[%s529_s1 + $0x94] ss:$8 sps:$4 sm:$0xff]   ;;  %v393_v20 = vld [vmem:[%s529_s1 + $0x90] ss:$8 sps:$4 sm:$0xff]  }
   0x8   :  { %157 = vmatprep.subr.bf16.mxu0 %v370_v4  ;;  %v394_v21 = vld [vmem:[%s530_s0] ss:$8 sps:$4 sm:$0xff]  }
   0xb   :  { %158 = vmatpush1.bf16.msra.mxu0 %v372_v5 }
   0xc   :  { %159 = vmatprep.subr.bf16.mxu0 %v373_v6  ;;  %v401_v6 = vmov 1966171168  }
   0xf   :  { %160 = vmatpush1.bf16.msra.mxu0 %v375_v7  ;;  %v247_v7 = vunpack.c.l.s4 %v401_v6 }
  0x10   :  { %161 = vmatprep.subr.bf16.mxu0 %v376_v8  ;;  %v249_v8 = vlaneseq }
  0x11   :  { %v248_v9 = vunpack.c.0.s8 %v247_v7 }
  0x13   :  { %162 = vmatpush1.bf16.msra.mxu0 %v378_v10  ;;  %v250_v10 = vshrl.u32 %v249_v8, 7 }
  0x14   :  { %163 = vmatprep.subr.bf16.mxu0 %v379_v11 }
  0x17   :  { %164 = vmatpush1.bf16.msra.mxu0 %v381_v12  ;;  %v251_v12 = vsub.s32 %v248_v9, %v250_v10 }
  0x18   :  { %165 = vmatprep.subr.bf16.mxu0 %v382_v13 }
  0x1b   :  { %166 = vmatpush1.bf16.msra.mxu0 %v384_v14 }
  0x1c   :  { %167 = vmatprep.subr.bf16.mxu0 %v385_v15 }
  0x1f   :  { %168 = vmatpush1.bf16.msra.mxu0 %v387_v16  ;;  %v238_v16 = vld [vmem:[%s531_s2] sm:$0x3] }
  0x20   :  { %169 = vmatprep.subr.bf16.mxu0 %v388_v17 }
  0x23   :  { %170 = vmatpush1.bf16.msra.mxu0 %v390_v18  ;;  %v266_v18 = vsub.s32 0, %v250_v10 }
  0x24   :  { %171 = vmatprep.subr.bf16.mxu0 %v391_v19  ;;  %v270_v19 = vsub.s32 1, %v250_v10 }
  0x27   :  { %172 = vmatpush1.bf16.msra.mxu0 %v393_v20 }
  0x2a   :  { %186 = vmatmul.mubr.bf16.vlgmr.msra.gmra.mrb[0].mxu0 %v394_v21 }
  0xfd   :  { %v493_v22 = vpop.f32.mrb[0].mxu0 }
  0xfe   :  { %v495_v23 = vpop.f32.mrb[1].mxu0  ;;  %v210_v25 = vmul.f32 %v493_v22, %v493_v22 }
  0xff   :  { %v497_v24 = vpop.f32.mrb[2].mxu0  ;;  %v211_v29 = vmul.f32 %v495_v23, %v495_v23 }
 0x100   :  { %v196_v26 = vadd.f32 %v497_v24, %v493_v22  ;;  %v212_v27 = vmul.f32 %v497_v24, %v497_v24  ;;  %v505_v28 = vpop.f32.mrb[3].mxu0 }
 0x101   :  { %v203_v30 = vadd.f32 %v505_v28, %v495_v23  ;;  %v213_v31 = vmul.f32 %v505_v28, %v505_v28 }
 0x102   :  { %v197_v32 = vrot.slane %v196_v26, 4  ;;  %v214_v33 = vadd.f32 %v212_v27, %v210_v25 }
 0x103   :  { %v204_v34 = vrot.slane %v203_v30, 4  ;;  %v221_v35 = vadd.f32 %v213_v31, %v211_v29 }
 0x104   :  { %v198_v36 = vadd.f32 %v197_v32, %v196_v26  ;;  %v215_v37 = vrot.slane %v214_v33, 4 }
 0x105   :  { %v205_v38 = vadd.f32 %v204_v34, %v203_v30  ;;  %v222_v39 = vrot.slane %v221_v35, 4 }
 0x106   :  { %v199_v40 = vrot.slane %v198_v36, 2  ;;  %v216_v41 = vadd.f32 %v215_v37, %v214_v33 }
 0x107   :  { %v206_v42 = vrot.slane %v205_v38, 2  ;;  %v223_v43 = vadd.f32 %v222_v39, %v221_v35  ;;  %v262_v35 = vld [vmem:[%s532_s3] sm:$0x3] }
 0x108   :  { %v200_v44 = vadd.f32 %v199_v40, %v198_v36  ;;  %v217_v45 = vrot.slane %v216_v41, 2 }
 0x109   :  { %v207_v46 = vadd.f32 %v206_v42, %v205_v38  ;;  %v224_v47 = vrot.slane %v223_v43, 2 }
 0x10a   :  { %v201_v48 = vrot.slane %v200_v44, 1  ;;  %v218_v49 = vadd.f32 %v217_v45, %v216_v41 }
 0x10b   :  { %v208_v50 = vrot.slane %v207_v46, 1  ;;  %v225_v51 = vadd.f32 %v224_v47, %v223_v43 }
 0x10c   :  { %v202_v52 = vadd.f32 %v201_v48, %v200_v44  ;;  %v219_v53 = vrot.slane %v218_v49, 1 }
 0x10d   :  { %v209_v54 = vadd.f32 %v208_v50, %v207_v46  ;;  %v226_v55 = vrot.slane %v225_v51, 1 }
 0x10e   :  { %v220_v56 = vadd.f32 %v219_v53, %v218_v49  ;;  %v228_v57 = vmul.f32 0.0625, %v202_v52 }
 0x10f   :  { %v227_v58 = vadd.f32 %v226_v55, %v225_v51  ;;  %v229_v59 = vmul.f32 0.0625, %v209_v54 }
 0x110   :  { %v230_v60 = vmul.f32 0.0625, %v220_v56  ;;  %v232_v61 = vmul.f32 %v228_v57, %v228_v57 }
 0x111   :  { %v231_v62 = vmul.f32 0.0625, %v227_v58  ;;  %v233_v63 = vmul.f32 %v229_v59, %v229_v59 }
 0x112   :  { %v234_v0 = vsub.f32 %v230_v60, %v232_v61 }
 0x113   :  { %v235_v1 = vsub.f32 %v231_v62, %v233_v63 }
 0x114   :  { %v236_v2 = vmax.f32 %v234_v0, 0.0 }
 0x115   :  { %v237_v3 = vmax.f32 %v235_v1, 0.0 }
 0x116   :  { %v239_v4 = vadd.f32 1e-05, %v236_v2 }
 0x117   :  { %v240_v5 = vadd.f32 1e-05, %v237_v3 }
 0x118   :  { %397 = vrsqrt.f32 %v239_v4 }
 0x119   :  { %399 = vrsqrt.f32 %v240_v5 }
 0x122   :  { %v398_v11 = vpop.eup %397 }
 0x123   :  { %v400_v13 = vpop.eup %399 }
 0x124   :  { %v245_v14 = vcombine.low %v398_v11, %v400_v13 }
 0x126   :  { %v252_v15 = vrot.slane %v245_v14, %v251_v12 }
 0x128   :  { %v259_v17 = vrot.slane %v252_v15, %v251_v12 }
 0x12a   :  { %v261_v20 = vmul.f32 %v259_v17, %v238_v16 }
 0x12c   :  { %v267_v21 = vrot.slane %v261_v20, %v266_v18  ;;  %v271_v25 = vrot.slane %v261_v20, %v270_v19 }
 0x12e   :  { %v274_v26 = vmul.f32 %v267_v21, %v228_v57  ;;  %v275_v27 = vmul.f32 %v271_v25, %v229_v59  ;;  %v295_v29 = vmul.f32 %v267_v21, %v493_v22  ;;  %v296_v30 = vmul.f32 %v271_v25, %v495_v23 }
 0x12f   :  { %v297_v31 = vmul.f32 %v267_v21, %v497_v24  ;;  %v298_v32 = vmul.f32 %v271_v25, %v505_v28 }
 0x130   :  { %v278_v33 = vcombine.low %v274_v26, %v275_v27 }
 0x132   :  { %v285_v34 = vrot.slane %v278_v33, %v251_v12 }
 0x134   :  { %v292_v36 = vrot.slane %v285_v34, %v251_v12 }
 0x136   :  { %v294_v37 = vsub.f32 %v262_v35, %v292_v36 }
 0x138   :  { %v303_v38 = vrot.slane %v294_v37, %v266_v18  ;;  %v307_v39 = vrot.slane %v294_v37, %v270_v19 }
 0x13a   :  { %v310_v40 = vadd.f32 %v303_v38, %v295_v29  ;;  %v311_v41 = vadd.f32 %v307_v39, %v296_v30  ;;  %v312_v42 = vadd.f32 %v303_v38, %v297_v31  ;;  %v313_v22 = vadd.f32 %v307_v39, %v298_v32 }
 0x13c   :  { %v314_v43 = vmax.f32 %v310_v40, 0.0  ;;  %v315_v23 = vmax.f32 %v311_v41, 0.0  ;;  %v316_v44 = vmax.f32 %v312_v42, 0.0  ;;  %v317_v24 = vmax.f32 %v313_v22, 0.0 }
 0x13e   :  { %v361_v45 = vpack.c.bf16 %v315_v23, %v314_v43  ;;  %v362_v28 = vpack.c.bf16 %v317_v24, %v316_v44 }
 0x140   :  { %330 = vst [vmem:[%s533_s4] sm:$0xff] %v361_v45  ;;  %331 = vst [vmem:[%s533_s4 + $0x8] sm:$0xff] %v362_v28 }

// kernel: word_cnn.3
= control target key start
LH: loop header
LB: loop body
LE: loop exit
PB: predicated region body
PF: predicated region fallthrough
CT: control target
= control target key end

     0   :  { %9 = vsyncpa [#allocation4], 0  ;;  %s2491_s0 = inlined_call_operand.vmem [shape: bf16[16,768], index: 0, kind: input, shape index: {}]   ;;  %s2492_s1 = inlined_call_operand.vmem [shape: bf16[768,512], index: 1, kind: input, shape index: {}]   ;;  %s2493_s2 = inlined_call_operand.vmem [shape: f32[1,512], index: 2, kind: input, shape index: {}]   ;;  %s2494_s3 = inlined_call_operand.vmem [shape: f32[1,512], index: 3, kind: input, shape index: {}]   ;;  %s2495_s4 = inlined_call_operand.hbm [shape: f32[16,512], index: 4, kind: output, shape index: {}]  }
   0x1   :  { %11 = vsyncpa [#allocation4 + $0x1], 0  ;;  %s2036_s15 = smov 0   ;;  %s2038_s16 = smov 0  }
   0x2   :  { %s2040_s17 = smov 0   ;;  %s2042_s18 = smov 0  }
   0x3 LB: > { %s2057_s19 = sadd.s32 4294967295, %s2004_s18   ;;  %s1614_s20 = sadd.s32 4294967294, %s2004_s18   ;;  %s2004_s18 = sphi %s2042_s18, %s2501_s18   ;;  %s2000_s17 = sphi %s2040_s17, %s2500_s17   ;;  %s1996_s16 = sphi %s2038_s16, %s2499_s16   ;;  %s1992_s15 = sphi %s2036_s15, %s2498_s15  }
   0x4   : > { %s2061_s21 = sadd.s32 1, %s2004_s18   ;;  %s45_s22 = sadd.s32 1, %s2000_s17 }
   0x5   : > { %s42_s23 = ssub.s32 %s2004_s18, %s2061_s21  ;;  %p52_p0 = scmp.ne.s32.totalorder %s2000_s17, %s1996_s16 }
   0x6   : > { %p43_p1 = scmp.eq.s32.totalorder %s42_s23, 0  ;;  %p53_p2 = scmp.eq.s32.totalorder %s2004_s18, 0 }
   0x7   : > { %p134_p3 = scmp.eq.s32.totalorder %s2057_s19, 1  ;;  %p139_p4 = scmp.ne.s32.totalorder %s1996_s16, %s1992_s15 }
   0x8   : > { %s2073_s24 = scalar_select %p43_p1, %s2000_s17, %s45_s22  }
   0x9   : > { %p54_p5 = por %p53_p2, %p52_p0  ;;  %p2075_p6 = por %p134_p3, %p52_p0 }
   0xa   : > { %p140_p7 = scmp.eq.s32.totalorder %s1614_s20, 1  ;;  %p1616_p9 = scmp.ge.s32.totalorder %s2004_s18, 2 }
   0xc   : > { %p2079_p8 = por %p140_p7, %p139_p4  ;;  %159 = sbr.rel (%p1616_p9) target bundleno = 71 (0x47), region = 20 }
  0x13   : > { %162 = sbr.rel (!%p54_p5) target bundleno = 71 (0x47), region = 24  ;;  %s164_s27 = sand.u32 (%p54_p5), 1, %s2000_s17  }
  0x14   : > { %s1730_s28 = sshll.u32 (%p54_p5), %s2004_s18, 3  ;;  %s1740_s29 = smul.u32 (%p54_p5), 768, %s164_s27 }
  0x15   : > { %s2091_s6 = scalar_lea.vmem (%p54_p5), %s2492_s1, %s1730_s28 }
  0x16   : > { %v387_v0 = vld [vmem:[%s2091_s6] sm:$0xff] (%p54_p5)  ;;  %v389_v1 = vld [vmem:[%s2091_s6 + $0x10] sm:$0xff] (%p54_p5)  ;;  %s2099_s7 = scalar_lea.vmem (%p54_p5), [#allocation2], %s1740_s29 }
  0x17   : > { %v391_v2 = vld [vmem:[%s2091_s6 + $0x20] sm:$0xff] (%p54_p5)  ;;  %v393_v3 = vld [vmem:[%s2091_s6 + $0x30] sm:$0xff] (%p54_p5)  ;;  %388 = vst [vmem:[%s2099_s7] sm:$0xff] (%p54_p5), %v387_v0  ;;  %390 = vst [vmem:[%s2099_s7 + $0x8] sm:$0xff] (%p54_p5), %v389_v1 }
  0x18   : > { %v395_v4 = vld [vmem:[%s2091_s6 + $0x40] sm:$0xff] (%p54_p5)  ;;  %v397_v5 = vld [vmem:[%s2091_s6 + $0x50] sm:$0xff] (%p54_p5)  ;;  %392 = vst [vmem:[%s2099_s7 + $0x10] sm:$0xff] (%p54_p5), %v391_v2  ;;  %394 = vst [vmem:[%s2099_s7 + $0x18] sm:$0xff] (%p54_p5), %v393_v3 }
  0x19   : > { %396 = vst [vmem:[%s2099_s7 + $0x20] sm:$0xff] (%p54_p5), %v395_v4  ;;  %398 = vst [vmem:[%s2099_s7 + $0x28] sm:$0xff] (%p54_p5), %v397_v5  ;;  %v399_v6 = vld [vmem:[%s2091_s6 + $0x60] sm:$0xff] (%p54_p5)  ;;  %v401_v7 = vld [vmem:[%s2091_s6 + $0x70] sm:$0xff] (%p54_p5) }
  0x1a   : > { %v403_v8 = vld [vmem:[%s2091_s6 + $0x80] sm:$0xff]  ;;  %400 = vst [vmem:[%s2099_s7 + $0x30] sm:$0xff] %v399_v6  ;;  %402 = vst [vmem:[%s2099_s7 + $0x38] sm:$0xff] %v401_v7  ;;  %v405_v9 = vld [vmem:[%s2091_s6 + $0x90] sm:$0xff] }
  0x1b   : > { %404 = vst [vmem:[%s2099_s7 + $0x40] sm:$0xff] %v403_v8  ;;  %v407_v10 = vld [vmem:[%s2091_s6 + $0xa0] sm:$0xff]  ;;  %v409_v11 = vld [vmem:[%s2091_s6 + $0xb0] sm:$0xff]  ;;  %406 = vst [vmem:[%s2099_s7 + $0x48] sm:$0xff] %v405_v9 }
  0x1c   : > { %408 = vst [vmem:[%s2099_s7 + $0x50] sm:$0xff] %v407_v10  ;;  %410 = vst [vmem:[%s2099_s7 + $0x58] sm:$0xff] %v409_v11  ;;  %v411_v12 = vld [vmem:[%s2091_s6 + $0xc0] sm:$0xff]  ;;  %v413_v13 = vld [vmem:[%s2091_s6 + $0xd0] sm:$0xff] }
  0x1d   : > { %v415_v14 = vld [vmem:[%s2091_s6 + $0xe0] sm:$0xff]  ;;  %412 = vst [vmem:[%s2099_s7 + $0x60] sm:$0xff] %v411_v12  ;;  %414 = vst [vmem:[%s2099_s7 + $0x68] sm:$0xff] %v413_v13  ;;  %v417_v15 = vld [vmem:[%s2091_s6 + $0xf0] sm:$0xff] }
  0x1e   : > { %416 = vst [vmem:[%s2099_s7 + $0x70] sm:$0xff] %v415_v14  ;;  %v419_v16 = vld [vmem:[%s2091_s6 + $0x100] sm:$0xff]  ;;  %v421_v17 = vld [vmem:[%s2091_s6 + $0x110] sm:$0xff]  ;;  %418 = vst [vmem:[%s2099_s7 + $0x78] sm:$0xff] %v417_v15 }
  0x1f   : > { %420 = vst [vmem:[%s2099_s7 + $0x80] sm:$0xff] %v419_v16  ;;  %422 = vst [vmem:[%s2099_s7 + $0x88] sm:$0xff] %v421_v17  ;;  %v423_v18 = vld [vmem:[%s2091_s6 + $0x120] sm:$0xff]  ;;  %v425_v19 = vld [vmem:[%s2091_s6 + $0x130] sm:$0xff] }
  0x20   : > { %v427_v20 = vld [vmem:[%s2091_s6 + $0x140] sm:$0xff]  ;;  %424 = vst [vmem:[%s2099_s7 + $0x90] sm:$0xff] %v423_v18  ;;  %426 = vst [vmem:[%s2099_s7 + $0x98] sm:$0xff] %v425_v19  ;;  %v429_v21 = vld [vmem:[%s2091_s6 + $0x150] sm:$0xff] }
  0x21   : > { %428 = vst [vmem:[%s2099_s7 + $0xa0] sm:$0xff] %v427_v20  ;;  %v431_v22 = vld [vmem:[%s2091_s6 + $0x160] sm:$0xff]  ;;  %v433_v23 = vld [vmem:[%s2091_s6 + $0x170] sm:$0xff]  ;;  %430 = vst [vmem:[%s2099_s7 + $0xa8] sm:$0xff] %v429_v21 }
  0x22   : > { %432 = vst [vmem:[%s2099_s7 + $0xb0] sm:$0xff] %v431_v22  ;;  %434 = vst [vmem:[%s2099_s7 + $0xb8] sm:$0xff] %v433_v23  ;;  %v435_v24 = vld [vmem:[%s2091_s6 + $0x180] sm:$0xff]  ;;  %v437_v25 = vld [vmem:[%s2091_s6 + $0x190] sm:$0xff] }
  0x23   : > { %v439_v26 = vld [vmem:[%s2091_s6 + $0x1a0] sm:$0xff]  ;;  %436 = vst [vmem:[%s2099_s7 + $0xc0] sm:$0xff] %v435_v24  ;;  %438 = vst [vmem:[%s2099_s7 + $0xc8] sm:$0xff] %v437_v25  ;;  %v441_v27 = vld [vmem:[%s2091_s6 + $0x1b0] sm:$0xff] }
  0x24   : > { %440 = vst [vmem:[%s2099_s7 + $0xd0] sm:$0xff] %v439_v26  ;;  %v443_v28 = vld [vmem:[%s2091_s6 + $0x1c0] sm:$0xff]  ;;  %v445_v29 = vld [vmem:[%s2091_s6 + $0x1d0] sm:$0xff]  ;;  %442 = vst [vmem:[%s2099_s7 + $0xd8] sm:$0xff] %v441_v27 }
  0x25   : > { %444 = vst [vmem:[%s2099_s7 + $0xe0] sm:$0xff] %v443_v28  ;;  %446 = vst [vmem:[%s2099_s7 + $0xe8] sm:$0xff] %v445_v29  ;;  %v447_v30 = vld [vmem:[%s2091_s6 + $0x1e0] sm:$0xff]  ;;  %v449_v31 = vld [vmem:[%s2091_s6 + $0x1f0] sm:$0xff] }
  0x26   : > { %v451_v32 = vld [vmem:[%s2091_s6 + $0x200] sm:$0xff]  ;;  %448 = vst [vmem:[%s2099_s7 + $0xf0] sm:$0xff] %v447_v30  ;;  %450 = vst [vmem:[%s2099_s7 + $0xf8] sm:$0xff] %v449_v31  ;;  %v453_v33 = vld [vmem:[%s2091_s6 + $0x210] sm:$0xff] }
  0x27   : > { %452 = vst [vmem:[%s2099_s7 + $0x100] sm:$0xff] %v451_v32  ;;  %v455_v34 = vld [vmem:[%s2091_s6 + $0x220] sm:$0xff]  ;;  %v457_v35 = vld [vmem:[%s2091_s6 + $0x230] sm:$0xff]  ;;  %454 = vst [vmem:[%s2099_s7 + $0x108] sm:$0xff] %v453_v33 }
  0x28   : > { %456 = vst [vmem:[%s2099_s7 + $0x110] sm:$0xff] %v455_v34  ;;  %458 = vst [vmem:[%s2099_s7 + $0x118] sm:$0xff] %v457_v35  ;;  %v459_v36 = vld [vmem:[%s2091_s6 + $0x240] sm:$0xff]  ;;  %v461_v37 = vld [vmem:[%s2091_s6 + $0x250] sm:$0xff] }
  0x29   : > { %v463_v38 = vld [vmem:[%s2091_s6 + $0x260] sm:$0xff]  ;;  %460 = vst [vmem:[%s2099_s7 + $0x120] sm:$0xff] %v459_v36  ;;  %462 = vst [vmem:[%s2099_s7 + $0x128] sm:$0xff] %v461_v37  ;;  %v465_v39 = vld [vmem:[%s2091_s6 + $0x270] sm:$0xff] }
  0x2a   : > { %464 = vst [vmem:[%s2099_s7 + $0x130] sm:$0xff] %v463_v38  ;;  %v467_v40 = vld [vmem:[%s2091_s6 + $0x280] sm:$0xff]  ;;  %v469_v41 = vld [vmem:[%s2091_s6 + $0x290] sm:$0xff]  ;;  %466 = vst [vmem:[%s2099_s7 + $0x138] sm:$0xff] %v465_v39 }
  0x2b   : > { %468 = vst [vmem:[%s2099_s7 + $0x140] sm:$0xff] %v467_v40  ;;  %470 = vst [vmem:[%s2099_s7 + $0x148] sm:$0xff] %v469_v41  ;;  %v471_v42 = vld [vmem:[%s2091_s6 + $0x2a0] sm:$0xff]  ;;  %v473_v43 = vld [vmem:[%s2091_s6 + $0x2b0] sm:$0xff] }
  0x2c   : > { %v475_v44 = vld [vmem:[%s2091_s6 + $0x2c0] sm:$0xff]  ;;  %472 = vst [vmem:[%s2099_s7 + $0x150] sm:$0xff] %v471_v42  ;;  %474 = vst [vmem:[%s2099_s7 + $0x158] sm:$0xff] %v473_v43  ;;  %v477_v45 = vld [vmem:[%s2091_s6 + $0x2d0] sm:$0xff] }
  0x2d   : > { %476 = vst [vmem:[%s2099_s7 + $0x160] sm:$0xff] %v475_v44  ;;  %v479_v46 = vld [vmem:[%s2091_s6 + $0x2e0] sm:$0xff]  ;;  %v481_v47 = vld [vmem:[%s2091_s6 + $0x2f0] sm:$0xff]  ;;  %478 = vst [vmem:[%s2099_s7 + $0x168] sm:$0xff] %v477_v45 }
  0x2e   : > { %480 = vst [vmem:[%s2099_s7 + $0x170] sm:$0xff] %v479_v46  ;;  %482 = vst [vmem:[%s2099_s7 + $0x178] sm:$0xff] %v481_v47  ;;  %v483_v48 = vld [vmem:[%s2091_s6 + $0x300] sm:$0xff]  ;;  %v485_v49 = vld [vmem:[%s2091_s6 + $0x310] sm:$0xff] }
  0x2f   : > { %v487_v50 = vld [vmem:[%s2091_s6 + $0x320] sm:$0xff]  ;;  %484 = vst [vmem:[%s2099_s7 + $0x180] sm:$0xff] %v483_v48  ;;  %486 = vst [vmem:[%s2099_s7 + $0x188] sm:$0xff] %v485_v49  ;;  %v489_v51 = vld [vmem:[%s2091_s6 + $0x330] sm:$0xff] }
  0x30   : > { %488 = vst [vmem:[%s2099_s7 + $0x190] sm:$0xff] %v487_v50  ;;  %v491_v52 = vld [vmem:[%s2091_s6 + $0x340] sm:$0xff]  ;;  %v493_v53 = vld [vmem:[%s2091_s6 + $0x350] sm:$0xff]  ;;  %490 = vst [vmem:[%s2099_s7 + $0x198] sm:$0xff] %v489_v51 }
  0x31   : > { %492 = vst [vmem:[%s2099_s7 + $0x1a0] sm:$0xff] %v491_v52  ;;  %494 = vst [vmem:[%s2099_s7 + $0x1a8] sm:$0xff] %v493_v53  ;;  %v495_v54 = vld [vmem:[%s2091_s6 + $0x360] sm:$0xff]  ;;  %v497_v55 = vld [vmem:[%s2091_s6 + $0x370] sm:$0xff] }
  0x32   : > { %v499_v56 = vld [vmem:[%s2091_s6 + $0x380] sm:$0xff]  ;;  %496 = vst [vmem:[%s2099_s7 + $0x1b0] sm:$0xff] %v495_v54  ;;  %498 = vst [vmem:[%s2099_s7 + $0x1b8] sm:$0xff] %v497_v55  ;;  %v501_v57 = vld [vmem:[%s2091_s6 + $0x390] sm:$0xff] }
  0x33   : > { %500 = vst [vmem:[%s2099_s7 + $0x1c0] sm:$0xff] %v499_v56  ;;  %v503_v58 = vld [vmem:[%s2091_s6 + $0x3a0] sm:$0xff]  ;;  %v505_v59 = vld [vmem:[%s2091_s6 + $0x3b0] sm:$0xff]  ;;  %502 = vst [vmem:[%s2099_s7 + $0x1c8] sm:$0xff] %v501_v57 }
  0x34   : > { %504 = vst [vmem:[%s2099_s7 + $0x1d0] sm:$0xff] %v503_v58  ;;  %506 = vst [vmem:[%s2099_s7 + $0x1d8] sm:$0xff] %v505_v59  ;;  %v507_v60 = vld [vmem:[%s2091_s6 + $0x3c0] sm:$0xff]  ;;  %v509_v61 = vld [vmem:[%s2091_s6 + $0x3d0] sm:$0xff] }
  0x35   : > { %v511_v62 = vld [vmem:[%s2091_s6 + $0x3e0] sm:$0xff]  ;;  %508 = vst [vmem:[%s2099_s7 + $0x1e0] sm:$0xff] %v507_v60  ;;  %510 = vst [vmem:[%s2099_s7 + $0x1e8] sm:$0xff] %v509_v61  ;;  %v513_v63 = vld [vmem:[%s2091_s6 + $0x3f0] sm:$0xff] }
  0x36   : > { %512 = vst [vmem:[%s2099_s7 + $0x1f0] sm:$0xff] %v511_v62  ;;  %v515_v0 = vld [vmem:[%s2091_s6 + $0x400] sm:$0xff]  ;;  %v517_v1 = vld [vmem:[%s2091_s6 + $0x410] sm:$0xff]  ;;  %514 = vst [vmem:[%s2099_s7 + $0x1f8] sm:$0xff] %v513_v63 }
  0x37   : > { %516 = vst [vmem:[%s2099_s7 + $0x200] sm:$0xff] %v515_v0  ;;  %518 = vst [vmem:[%s2099_s7 + $0x208] sm:$0xff] %v517_v1  ;;  %v519_v2 = vld [vmem:[%s2091_s6 + $0x420] sm:$0xff]  ;;  %v521_v3 = vld [vmem:[%s2091_s6 + $0x430] sm:$0xff] }
  0x38   : > { %v523_v4 = vld [vmem:[%s2091_s6 + $0x440] sm:$0xff]  ;;  %520 = vst [vmem:[%s2099_s7 + $0x210] sm:$0xff] %v519_v2  ;;  %522 = vst [vmem:[%s2099_s7 + $0x218] sm:$0xff] %v521_v3  ;;  %v525_v5 = vld [vmem:[%s2091_s6 + $0x450] sm:$0xff] }
  0x39   : > { %524 = vst [vmem:[%s2099_s7 + $0x220] sm:$0xff] %v523_v4  ;;  %v527_v6 = vld [vmem:[%s2091_s6 + $0x460] sm:$0xff]  ;;  %v529_v7 = vld [vmem:[%s2091_s6 + $0x470] sm:$0xff]  ;;  %526 = vst [vmem:[%s2099_s7 + $0x228] sm:$0xff] %v525_v5 }
  0x3a   : > { %528 = vst [vmem:[%s2099_s7 + $0x230] sm:$0xff] %v527_v6  ;;  %530 = vst [vmem:[%s2099_s7 + $0x238] sm:$0xff] %v529_v7  ;;  %v531_v8 = vld [vmem:[%s2091_s6 + $0x480] sm:$0xff]  ;;  %v533_v9 = vld [vmem:[%s2091_s6 + $0x490] sm:$0xff] }
  0x3b   : > { %v535_v10 = vld [vmem:[%s2091_s6 + $0x4a0] sm:$0xff]  ;;  %532 = vst [vmem:[%s2099_s7 + $0x240] sm:$0xff] %v531_v8  ;;  %534 = vst [vmem:[%s2099_s7 + $0x248] sm:$0xff] %v533_v9  ;;  %v537_v11 = vld [vmem:[%s2091_s6 + $0x4b0] sm:$0xff] }
  0x3c   : > { %536 = vst [vmem:[%s2099_s7 + $0x250] sm:$0xff] %v535_v10  ;;  %v539_v12 = vld [vmem:[%s2091_s6 + $0x4c0] sm:$0xff]  ;;  %v541_v13 = vld [vmem:[%s2091_s6 + $0x4d0] sm:$0xff]  ;;  %538 = vst [vmem:[%s2099_s7 + $0x258] sm:$0xff] %v537_v11 }
  0x3d   : > { %540 = vst [vmem:[%s2099_s7 + $0x260] sm:$0xff] %v539_v12  ;;  %542 = vst [vmem:[%s2099_s7 + $0x268] sm:$0xff] %v541_v13  ;;  %v543_v14 = vld [vmem:[%s2091_s6 + $0x4e0] sm:$0xff]  ;;  %v545_v15 = vld [vmem:[%s2091_s6 + $0x4f0] sm:$0xff] }
  0x3e   : > { %v547_v16 = vld [vmem:[%s2091_s6 + $0x500] sm:$0xff]  ;;  %544 = vst [vmem:[%s2099_s7 + $0x270] sm:$0xff] %v543_v14  ;;  %546 = vst [vmem:[%s2099_s7 + $0x278] sm:$0xff] %v545_v15  ;;  %v549_v17 = vld [vmem:[%s2091_s6 + $0x510] sm:$0xff] }
  0x3f   : > { %548 = vst [vmem:[%s2099_s7 + $0x280] sm:$0xff] %v547_v16  ;;  %v551_v18 = vld [vmem:[%s2091_s6 + $0x520] sm:$0xff]  ;;  %v553_v19 = vld [vmem:[%s2091_s6 + $0x530] sm:$0xff]  ;;  %550 = vst [vmem:[%s2099_s7 + $0x288] sm:$0xff] %v549_v17 }
  0x40   : > { %552 = vst [vmem:[%s2099_s7 + $0x290] sm:$0xff] %v551_v18  ;;  %554 = vst [vmem:[%s2099_s7 + $0x298] sm:$0xff] %v553_v19  ;;  %v555_v20 = vld [vmem:[%s2091_s6 + $0x540] sm:$0xff]  ;;  %v557_v21 = vld [vmem:[%s2091_s6 + $0x550] sm:$0xff] }
  0x41   : > { %v559_v22 = vld [vmem:[%s2091_s6 + $0x560] sm:$0xff]  ;;  %556 = vst [vmem:[%s2099_s7 + $0x2a0] sm:$0xff] %v555_v20  ;;  %558 = vst [vmem:[%s2099_s7 + $0x2a8] sm:$0xff] %v557_v21  ;;  %v561_v23 = vld [vmem:[%s2091_s6 + $0x570] sm:$0xff] }
  0x42   : > { %560 = vst [vmem:[%s2099_s7 + $0x2b0] sm:$0xff] %v559_v22  ;;  %v563_v24 = vld [vmem:[%s2091_s6 + $0x580] sm:$0xff]  ;;  %v565_v25 = vld [vmem:[%s2091_s6 + $0x590] sm:$0xff]  ;;  %562 = vst [vmem:[%s2099_s7 + $0x2b8] sm:$0xff] %v561_v23 }
  0x43   : > { %564 = vst [vmem:[%s2099_s7 + $0x2c0] sm:$0xff] %v563_v24  ;;  %566 = vst [vmem:[%s2099_s7 + $0x2c8] sm:$0xff] %v565_v25  ;;  %v567_v26 = vld [vmem:[%s2091_s6 + $0x5a0] sm:$0xff]  ;;  %v569_v27 = vld [vmem:[%s2091_s6 + $0x5b0] sm:$0xff] }
  0x44   : > { %v571_v28 = vld [vmem:[%s2091_s6 + $0x5c0] sm:$0xff]  ;;  %568 = vst [vmem:[%s2099_s7 + $0x2d0] sm:$0xff] %v567_v26  ;;  %570 = vst [vmem:[%s2099_s7 + $0x2d8] sm:$0xff] %v569_v27  ;;  %v573_v29 = vld [vmem:[%s2091_s6 + $0x5d0] sm:$0xff] }
  0x45   : > { %572 = vst [vmem:[%s2099_s7 + $0x2e0] sm:$0xff] %v571_v28  ;;  %v575_v30 = vld [vmem:[%s2091_s6 + $0x5e0] sm:$0xff]  ;;  %v577_v31 = vld [vmem:[%s2091_s6 + $0x5f0] sm:$0xff]  ;;  %574 = vst [vmem:[%s2099_s7 + $0x2e8] sm:$0xff] %v573_v29 }
  0x46   : > { %576 = vst [vmem:[%s2099_s7 + $0x2f0] sm:$0xff] %v575_v30  ;;  %578 = vst [vmem:[%s2099_s7 + $0x2f8] sm:$0xff] %v577_v31 }
  0x47 PF: > { %p1619_p10 = scmp.ge.s32.totalorder %s2004_s18, 1  ;;  %p599_p11 = scmp.lt.s32.totalorder %s2004_s18, 3 }
  0x49   : > { %p600_p12 = pnand %p1619_p10, %p599_p11 }
  0x4a   : > { %s2290_s8 = sand.u32 (!%p600_p12), 1, %s1996_s16   ;;  %v1838_v32 = vld [vmem:[%s2491_s0 + $0xc] ss:$24 sps:$4 sm:$0xff] (!%p600_p12)   ;;  %v1836_v26 = vld [vmem:[%s2491_s0 + $0x8] ss:$24 sps:$4 sm:$0xff] (!%p600_p12)   ;;  %s1621_s6 = sshll.u32 (!%p600_p12), %s2057_s19, 1 }
  0x4b   : > { %603 = sbr.rel (%p600_p12) target bundleno = 501 (0x1f5), region = 70  ;;  %v1931_v33 = vld [vmem:[%s2491_s0 + $0x4] ss:$24 sps:$4 sm:$0xff] (!%p600_p12)   ;;  %1338 = vmatprep.mubr.bf16.mxu0 (!%p600_p12), %v1838_v32  ;;  %v1937_v28 = vld [vmem:[%s2491_s0 + $0x14] ss:$24 sps:$4 sm:$0xff] (!%p600_p12)   ;;  %p641_p13 = scmp.lt.s32.totalorder (!%p600_p12), %s1621_s6, 3 }
  0x4c   : > { %s1741_s9 = smul.u32 (!%p600_p12), 768, %s2290_s8  ;;  %1295 = vmatprep.mubr.bf16.mxu1 (!%p600_p12), %v1931_v33  ;;  %s1620_s11 = sshll.u32 (!%p600_p12), %s2290_s8, 5 }
  0x4d   : > { %s638_s20 = scalar_lea.vmem (!%p600_p12), [#allocation3], %s1620_s11  ;;  %s1731_s23 = sshll.u32 (!%p600_p12), %s2057_s19, 8 }
  0x4e   : > { %s2299_s14 = scalar_lea.vmem (!%p600_p12), [#allocation2], %s1741_s9  ;;  %s1528_s22 = sshll.u32 (!%p600_p12), %s638_s20, 4  ;;  %s2442_s22 = int_to_ptr.vmem [resolvable:$true] %s1528_s22 }
  0x4f   : > { %v1785_v34 = vld [vmem:[%s2299_s14 + $0x104] ss:$8 sps:$4 sm:$0xff] (!%p600_p12)   ;;  %v1787_v35 = vld [vmem:[%s2299_s14 + $0x100] ss:$8 sps:$4 sm:$0xff] (!%p600_p12)   ;;  %v1788_v36 = vld [vmem:[%s2299_s14 + $0x114] ss:$8 sps:$4 sm:$0xff] (!%p600_p12)   ;;  %s2447_s29 = scalar_lea.hbm (!%p600_p12), %s2495_s4, %s1731_s23 }
  0x50   : > { %1306 = vmatprep.subr.bf16.mxu0 (!%p600_p12), %v1785_v34  ;;  %v1790_v37 = vld [vmem:[%s2299_s14 + $0x110] ss:$8 sps:$4 sm:$0xff] (!%p600_p12)   ;;  %v1791_v38 = vld [vmem:[%s2299_s14 + $0x124] ss:$8 sps:$4 sm:$0xff] (!%p600_p12)   ;;  %v1793_v39 = vld [vmem:[%s2299_s14 + $0x120] ss:$8 sps:$4 sm:$0xff] (!%p600_p12)  }
  0x51   : > { %1307 = vmatpush1.bf16.msra.mxu0 (!%p600_p12), %v1787_v35  ;;  %v1794_v40 = vld [vmem:[%s2299_s14 + $0x134] ss:$8 sps:$4 sm:$0xff] (!%p600_p12)   ;;  %v1796_v41 = vld [vmem:[%s2299_s14 + $0x130] ss:$8 sps:$4 sm:$0xff] (!%p600_p12)   ;;  %v1797_v42 = vld [vmem:[%s2299_s14 + $0x144] ss:$8 sps:$4 sm:$0xff] (!%p600_p12)  }
  0x52   : > { %1308 = vmatprep.subr.bf16.mxu0 %v1788_v36  ;;  %v1799_v43 = vld [vmem:[%s2299_s14 + $0x140] ss:$8 sps:$4 sm:$0xff]   ;;  %v1800_v44 = vld [vmem:[%s2299_s14 + $0x154] ss:$8 sps:$4 sm:$0xff]   ;;  %v1802_v45 = vld [vmem:[%s2299_s14 + $0x150] ss:$8 sps:$4 sm:$0xff]  }
  0x53   : > { %v1803_v46 = vld [vmem:[%s2299_s14 + $0x164] ss:$8 sps:$4 sm:$0xff]   ;;  %v1835_v48 = vld [vmem:[%s2299_s14] ss:$8 sps:$4 sm:$0xff]   ;;  %v1806_v50 = vld [vmem:[%s2299_s14 + $0x174] ss:$8 sps:$4 sm:$0xff]  }
  0x54   : > { %v1832_v47 = vld [vmem:[%s2299_s14 + $0x4] ss:$8 sps:$4 sm:$0xff]   ;;  %v1805_v49 = vld [vmem:[%s2299_s14 + $0x160] ss:$8 sps:$4 sm:$0xff]   ;;  %v1842_v51 = vld [vmem:[%s2299_s14 + $0x14] ss:$8 sps:$4 sm:$0xff]  }
  0x55   : > { %1309 = vmatpush1.bf16.msra.mxu0 %v1790_v37  ;;  %1263 = vmatprep.subr.bf16.mxu1 %v1832_v47  ;;  %v1844_v52 = vld [vmem:[%s2299_s14 + $0x10] ss:$8 sps:$4 sm:$0xff]   ;;  %v1809_v54 = vld [vmem:[%s2299_s14 + $0x184] ss:$8 sps:$4 sm:$0xff]   ;;  %v1850_v56 = vld [vmem:[%s2299_s14 + $0x20] ss:$8 sps:$4 sm:$0xff]  }
  0x56   : > { %1310 = vmatprep.subr.bf16.mxu0 %v1791_v38  ;;  %1264 = vmatpush1.bf16.msra.mxu1 %v1835_v48  ;;  %v1808_v53 = vld [vmem:[%s2299_s14 + $0x170] ss:$8 sps:$4 sm:$0xff]   ;;  %v1848_v55 = vld [vmem:[%s2299_s14 + $0x24] ss:$8 sps:$4 sm:$0xff]   ;;  %v1854_v57 = vld [vmem:[%s2299_s14 + $0x34] ss:$8 sps:$4 sm:$0xff]  }
  0x57   : > { %1265 = vmatprep.subr.bf16.mxu1 %v1842_v51  ;;  %v1811_v58 = vld [vmem:[%s2299_s14 + $0x180] ss:$8 sps:$4 sm:$0xff]   ;;  %v1812_v59 = vld [vmem:[%s2299_s14 + $0x194] ss:$8 sps:$4 sm:$0xff]   ;;  %v1856_v60 = vld [vmem:[%s2299_s14 + $0x30] ss:$8 sps:$4 sm:$0xff]  }
  0x58   : > { %v1860_v61 = vld [vmem:[%s2299_s14 + $0x44] ss:$8 sps:$4 sm:$0xff]   ;;  %v1814_v62 = vld [vmem:[%s2299_s14 + $0x190] ss:$8 sps:$4 sm:$0xff]   ;;  %v1862_v0 = vld [vmem:[%s2299_s14 + $0x40] ss:$8 sps:$4 sm:$0xff]  }
  0x59   : > { %1311 = vmatpush1.bf16.msra.mxu0 %v1793_v39  ;;  %v1815_v63 = vld [vmem:[%s2299_s14 + $0x1a4] ss:$8 sps:$4 sm:$0xff]   ;;  %v1866_v1 = vld [vmem:[%s2299_s14 + $0x54] ss:$8 sps:$4 sm:$0xff]   ;;  %v1817_v2 = vld [vmem:[%s2299_s14 + $0x1a0] ss:$8 sps:$4 sm:$0xff]  }
  0x5a   : > { %1312 = vmatprep.subr.bf16.mxu0 %v1794_v40  ;;  %1266 = vmatpush1.bf16.msra.mxu1 %v1844_v52  ;;  %v1818_v3 = vld [vmem:[%s2299_s14 + $0x1b4] ss:$8 sps:$4 sm:$0xff]   ;;  %v1868_v4 = vld [vmem:[%s2299_s14 + $0x50] ss:$8 sps:$4 sm:$0xff]   ;;  %v1872_v5 = vld [vmem:[%s2299_s14 + $0x64] ss:$8 sps:$4 sm:$0xff]  }
  0x5b   : > { %1267 = vmatprep.subr.bf16.mxu1 %v1848_v55  ;;  %v1820_v6 = vld [vmem:[%s2299_s14 + $0x1b0] ss:$8 sps:$4 sm:$0xff]   ;;  %v1821_v7 = vld [vmem:[%s2299_s14 + $0x1c4] ss:$8 sps:$4 sm:$0xff]   ;;  %v1874_v8 = vld [vmem:[%s2299_s14 + $0x60] ss:$8 sps:$4 sm:$0xff]  }
  0x5c   : > { %v1878_v9 = vld [vmem:[%s2299_s14 + $0x74] ss:$8 sps:$4 sm:$0xff]   ;;  %v1823_v10 = vld [vmem:[%s2299_s14 + $0x1c0] ss:$8 sps:$4 sm:$0xff]   ;;  %v1880_v12 = vld [vmem:[%s2299_s14 + $0x70] ss:$8 sps:$4 sm:$0xff]  }
  0x5d   : > { %1313 = vmatpush1.bf16.msra.mxu0 %v1796_v41  ;;  %v1824_v11 = vld [vmem:[%s2299_s14 + $0x1d4] ss:$8 sps:$4 sm:$0xff]   ;;  %v1884_v13 = vld [vmem:[%s2299_s14 + $0x84] ss:$8 sps:$4 sm:$0xff]   ;;  %v1826_v14 = vld [vmem:[%s2299_s14 + $0x1d0] ss:$8 sps:$4 sm:$0xff]  }
  0x5e   : > { %1314 = vmatprep.subr.bf16.mxu0 %v1797_v42  ;;  %1268 = vmatpush1.bf16.msra.mxu1 %v1850_v56  ;;  %v1827_v15 = vld [vmem:[%s2299_s14 + $0x1e4] ss:$8 sps:$4 sm:$0xff]   ;;  %v1886_v16 = vld [vmem:[%s2299_s14 + $0x80] ss:$8 sps:$4 sm:$0xff]   ;;  %v1890_v17 = vld [vmem:[%s2299_s14 + $0x94] ss:$8 sps:$4 sm:$0xff]  }
  0x5f   : > { %1269 = vmatprep.subr.bf16.mxu1 %v1854_v57  ;;  %v1829_v18 = vld [vmem:[%s2299_s14 + $0x1e0] ss:$8 sps:$4 sm:$0xff]   ;;  %v1830_v19 = vld [vmem:[%s2299_s14 + $0x1f4] ss:$8 sps:$4 sm:$0xff]   ;;  %v1892_v20 = vld [vmem:[%s2299_s14 + $0x90] ss:$8 sps:$4 sm:$0xff]  }
  0x60   : > { %v1896_v21 = vld [vmem:[%s2299_s14 + $0xa4] ss:$8 sps:$4 sm:$0xff]   ;;  %v1834_v22 = vld [vmem:[%s2299_s14 + $0x1f0] ss:$8 sps:$4 sm:$0xff]   ;;  %v1898_v24 = vld [vmem:[%s2299_s14 + $0xa0] ss:$8 sps:$4 sm:$0xff]  }
  0x61   : > { %1315 = vmatpush1.bf16.msra.mxu0 %v1799_v43  ;;  %v1841_v23 = vld [vmem:[%s2299_s14 + $0x204] ss:$8 sps:$4 sm:$0xff]   ;;  %v1902_v25 = vld [vmem:[%s2299_s14 + $0xb4] ss:$8 sps:$4 sm:$0xff]   ;;  %v1839_v27 = vld [vmem:[%s2299_s14 + $0x200] ss:$8 sps:$4 sm:$0xff]  }
  0x62   : > { %1316 = vmatprep.subr.bf16.mxu0 %v1800_v44  ;;  %1270 = vmatpush1.bf16.msra.mxu1 %v1856_v60  ;;  %v1847_v29 = vld [vmem:[%s2299_s14 + $0x214] ss:$8 sps:$4 sm:$0xff]   ;;  %v1904_v30 = vld [vmem:[%s2299_s14 + $0xb0] ss:$8 sps:$4 sm:$0xff]   ;;  %v1908_v31 = vld [vmem:[%s2299_s14 + $0xc4] ss:$8 sps:$4 sm:$0xff]  }
  0x63   : > { %1271 = vmatprep.subr.bf16.mxu1 %v1860_v61  ;;  %v1845_v32 = vld [vmem:[%s2299_s14 + $0x210] ss:$8 sps:$4 sm:$0xff]   ;;  %v1853_v33 = vld [vmem:[%s2299_s14 + $0x224] ss:$8 sps:$4 sm:$0xff]   ;;  %v1910_v34 = vld [vmem:[%s2299_s14 + $0xc0] ss:$8 sps:$4 sm:$0xff]  }
  0x64   : > { %v1914_v35 = vld [vmem:[%s2299_s14 + $0xd4] ss:$8 sps:$4 sm:$0xff]   ;;  %v1851_v36 = vld [vmem:[%s2299_s14 + $0x220] ss:$8 sps:$4 sm:$0xff]   ;;  %v1916_v38 = vld [vmem:[%s2299_s14 + $0xd0] ss:$8 sps:$4 sm:$0xff]  }
  0x65   : > { %1317 = vmatpush1.bf16.msra.mxu0 %v1802_v45  ;;  %v1859_v37 = vld [vmem:[%s2299_s14 + $0x234] ss:$8 sps:$4 sm:$0xff]   ;;  %v1920_v39 = vld [vmem:[%s2299_s14 + $0xe4] ss:$8 sps:$4 sm:$0xff]   ;;  %v1857_v40 = vld [vmem:[%s2299_s14 + $0x230] ss:$8 sps:$4 sm:$0xff]  }
  0x66   : > { %1318 = vmatprep.subr.bf16.mxu0 %v1803_v46  ;;  %1272 = vmatpush1.bf16.msra.mxu1 %v1862_v0  ;;  %v1865_v41 = vld [vmem:[%s2299_s14 + $0x244] ss:$8 sps:$4 sm:$0xff]   ;;  %v1922_v42 = vld [vmem:[%s2299_s14 + $0xe0] ss:$8 sps:$4 sm:$0xff]   ;;  %v1926_v43 = vld [vmem:[%s2299_s14 + $0xf4] ss:$8 sps:$4 sm:$0xff]  }
  0x67   : > { %1273 = vmatprep.subr.bf16.mxu1 %v1866_v1  ;;  %v1863_v44 = vld [vmem:[%s2299_s14 + $0x240] ss:$8 sps:$4 sm:$0xff]   ;;  %v1871_v45 = vld [vmem:[%s2299_s14 + $0x254] ss:$8 sps:$4 sm:$0xff]   ;;  %v1928_v46 = vld [vmem:[%s2299_s14 + $0xf0] ss:$8 sps:$4 sm:$0xff]  }
  0x68   : > { %v1869_v47 = vld [vmem:[%s2299_s14 + $0x250] ss:$8 sps:$4 sm:$0xff]   ;;  %v1883_v51 = vld [vmem:[%s2299_s14 + $0x274] ss:$8 sps:$4 sm:$0xff]   ;;  %v1901_v57 = vld [vmem:[%s2299_s14 + $0x2a4] ss:$8 sps:$4 sm:$0xff]  }
  0x69   : > { %1319 = vmatpush1.bf16.msra.mxu0 %v1805_v49  ;;  %v1929_v48 = vld [vmem:[%s2491_s0] ss:$24 sps:$4 sm:$0xff]   ;;  %v1877_v49 = vld [vmem:[%s2299_s14 + $0x264] ss:$8 sps:$4 sm:$0xff]   ;;  %v1895_v55 = vld [vmem:[%s2299_s14 + $0x294] ss:$8 sps:$4 sm:$0xff]  }
  0x6a   : > { %1320 = vmatprep.subr.bf16.mxu0 %v1806_v50  ;;  %1274 = vmatpush1.bf16.msra.mxu1 %v1868_v4  ;;  %v1875_v50 = vld [vmem:[%s2299_s14 + $0x260] ss:$8 sps:$4 sm:$0xff]   ;;  %v1881_v52 = vld [vmem:[%s2299_s14 + $0x270] ss:$8 sps:$4 sm:$0xff]   ;;  %v1913_v61 = vld [vmem:[%s2299_s14 + $0x2c4] ss:$8 sps:$4 sm:$0xff]  }
  0x6b   : > { %1275 = vmatprep.subr.bf16.mxu1 %v1872_v5  ;;  %v1893_v56 = vld [vmem:[%s2299_s14 + $0x290] ss:$8 sps:$4 sm:$0xff]   ;;  %v1925_v1 = vld [vmem:[%s2299_s14 + $0x2e4] ss:$8 sps:$4 sm:$0xff]   ;;  %s2503_s6 = smov (!%p641_p13, %s1621_s6), 3  ;;  %s1515_s19 = scalar_lea.sflag [#allocation4], %s2290_s8 }
  0x6c   : > { %v1905_v60 = vld [vmem:[%s2299_s14 + $0x2b0] ss:$8 sps:$4 sm:$0xff]   ;;  %s643_s10 = scalar_lea.vmem %s2493_s2, %s2503_s6  ;;  %s1942_s30 = scalar_lea.vmem %s2442_s22, 512 }
  0x6d   : > { %1321 = vmatpush1.bf16.msra.mxu0 %v1808_v53  ;;  %v1889_v53 = vld [vmem:[%s2299_s14 + $0x284] ss:$8 sps:$4 sm:$0xff]   ;;  %v1917_v0 = vld [vmem:[%s2299_s14 + $0x2d0] ss:$8 sps:$4 sm:$0xff]   ;;  %p1943_p0 = scmp.ne.s32.totalorder %s2442_s22, %s1942_s30  ;;  %s2007_s5 = smov [#allocation3]  }
  0x6e   : > { %1322 = vmatprep.subr.bf16.mxu0 %v1809_v54  ;;  %1276 = vmatpush1.bf16.msra.mxu1 %v1874_v8  ;;  %v1887_v54 = vld [vmem:[%s2299_s14 + $0x280] ss:$8 sps:$4 sm:$0xff]   ;;  %v1932_v4 = vld [vmem:[%s2299_s14 + $0x2f0] ss:$8 sps:$4 sm:$0xff]  }
  0x6f   : > { %1277 = vmatprep.subr.bf16.mxu1 %v1878_v9  ;;  %v1935_v5 = vld [vmem:[%s2491_s0 + $0x10] ss:$24 sps:$4 sm:$0xff]   ;;  %p1944_p1 = pnand %p1943_p0, %p2075_p6 }
  0x71   : > { %1323 = vmatpush1.bf16.msra.mxu0 %v1811_v58  ;;  %v1899_v58 = vld [vmem:[%s2299_s14 + $0x2a0] ss:$8 sps:$4 sm:$0xff]   ;;  %p1945_p2 = pneg %p1944_p1 }
  0x72   : > { %1324 = vmatprep.subr.bf16.mxu0 %v1812_v59  ;;  %1278 = vmatpush1.bf16.msra.mxu1 %v1880_v12  ;;  %v1907_v59 = vld [vmem:[%s2299_s14 + $0x2b4] ss:$8 sps:$4 sm:$0xff]  }
  0x73   : > { %1279 = vmatprep.subr.bf16.mxu1 %v1884_v13 }
  0x75   : > { %1325 = vmatpush1.bf16.msra.mxu0 %v1814_v62  ;;  %v1911_v62 = vld [vmem:[%s2299_s14 + $0x2c0] ss:$8 sps:$4 sm:$0xff]  }
  0x76   : > { %1326 = vmatprep.subr.bf16.mxu0 %v1815_v63  ;;  %1280 = vmatpush1.bf16.msra.mxu1 %v1886_v16  ;;  %v1919_v63 = vld [vmem:[%s2299_s14 + $0x2d4] ss:$8 sps:$4 sm:$0xff]  }
  0x77   : > { %1281 = vmatprep.subr.bf16.mxu1 %v1890_v17 }
  0x79   : > { %1327 = vmatpush1.bf16.msra.mxu0 %v1817_v2  ;;  %v1923_v2 = vld [vmem:[%s2299_s14 + $0x2e0] ss:$8 sps:$4 sm:$0xff]  }
  0x7a   : > { %1328 = vmatprep.subr.bf16.mxu0 %v1818_v3  ;;  %1282 = vmatpush1.bf16.msra.mxu1 %v1892_v20  ;;  %v1934_v3 = vld [vmem:[%s2299_s14 + $0x2f4] ss:$8 sps:$4 sm:$0xff]   ;;  %s648_s14 = scalar_lea.vmem %s2494_s3, %s2503_s6  ;;  %s1946_s6 = sshll.u32 %s2007_s5, 4  ;;  %s1947_s6 = int_to_ptr.vmem [resolvable:$false] %s1946_s6 }
  0x7b   : > { %1283 = vmatprep.subr.bf16.mxu1 %v1896_v21  ;;  %s1948_s7 = scalar_lea.vmem %s1947_s6, 1024  ;;  %p1949_p3 = scmp.lt.s32.totalorder %s2442_s22, %s1947_s6 }
  0x7c   : > { %p1950_p4 = scmp.lt.s32.totalorder %s1948_s7, %s1942_s30 }
  0x7d   : > { %1329 = vmatpush1.bf16.msra.mxu0 %v1820_v6 }
  0x7e   : > { %1330 = vmatprep.subr.bf16.mxu0 %v1821_v7  ;;  %1284 = vmatpush1.bf16.msra.mxu1 %v1898_v24  ;;  %p1951_p5 = por %p1950_p4, %p1949_p3 }
  0x7f   : > { %1285 = vmatprep.subr.bf16.mxu1 %v1902_v25 }
  0x80   : > { %p1952_p7 = pnand %p1951_p5, %p1945_p2 }
  0x81   : > { %1331 = vmatpush1.bf16.msra.mxu0 %v1823_v10 }
  0x82   : > { %1332 = vmatprep.subr.bf16.mxu0 %v1824_v11  ;;  %1286 = vmatpush1.bf16.msra.mxu1 %v1904_v30 }
  0x83   : > { %1287 = vmatprep.subr.bf16.mxu1 %v1908_v31 }
  0x85   : > { %1333 = vmatpush1.bf16.msra.mxu0 %v1826_v14 }
  0x86   : > { %1334 = vmatprep.subr.bf16.mxu0 %v1827_v15  ;;  %1288 = vmatpush1.bf16.msra.mxu1 %v1910_v34 }
  0x87   : > { %1289 = vmatprep.subr.bf16.mxu1 %v1914_v35 }
  0x89   : > { %1335 = vmatpush1.bf16.msra.mxu0 %v1829_v18 }
  0x8a   : > { %1336 = vmatprep.subr.bf16.mxu0 %v1830_v19  ;;  %1290 = vmatpush1.bf16.msra.mxu1 %v1916_v38 }
  0x8b   : > { %1291 = vmatprep.subr.bf16.mxu1 %v1920_v39 }
  0x8d   : > { %1337 = vmatpush1.bf16.msra.mxu0 %v1834_v22 }
  0x8e   : > { %1349 = vmatprep.subr.bf16.mxu0 %v1841_v23  ;;  %1292 = vmatpush1.bf16.msra.mxu1 %v1922_v42 }
  0x8f   : > { %1293 = vmatprep.subr.bf16.mxu1 %v1926_v43 }
  0x90   : > { %1339 = vmatmul.mubr.bf16.vlgmr.msra.gmra.mrb[0].mxu0 %v1836_v26 }
  0x91   : > { %1350 = vmatpush1.bf16.msra.mxu0 %v1839_v27  ;;  %1381 = vmatprep.mubr.bf16.mxu0 %v1937_v28 }
  0x92   : > { %1351 = vmatprep.subr.bf16.mxu0 %v1847_v29  ;;  %1294 = vmatpush1.bf16.msra.mxu1 %v1928_v46 }
  0x95   : > { %1352 = vmatpush1.bf16.msra.mxu0 %v1845_v32  ;;  %1296 = vmatmul.mubr.bf16.vlgmr.msra.gmra.mrb[0].mxu1 %v1929_v48 }
  0x96   : > { %1353 = vmatprep.subr.bf16.mxu0 %v1853_v33 }
  0x99   : > { %1354 = vmatpush1.bf16.msra.mxu0 %v1851_v36 }
  0x9a   : > { %1355 = vmatprep.subr.bf16.mxu0 %v1859_v37 }
  0x9d   : > { %1356 = vmatpush1.bf16.msra.mxu0 %v1857_v40 }
  0x9e   : > { %1357 = vmatprep.subr.bf16.mxu0 %v1865_v41 }
  0xa1   : > { %1358 = vmatpush1.bf16.msra.mxu0 %v1863_v44 }
  0xa2   : > { %1359 = vmatprep.subr.bf16.mxu0 %v1871_v45 }
  0xa5   : > { %1360 = vmatpush1.bf16.msra.mxu0 %v1869_v47 }
  0xa6   : > { %1361 = vmatprep.subr.bf16.mxu0 %v1877_v49 }
  0xa9   : > { %1362 = vmatpush1.bf16.msra.mxu0 %v1875_v50 }
  0xaa   : > { %1363 = vmatprep.subr.bf16.mxu0 %v1883_v51 }
  0xad   : > { %1364 = vmatpush1.bf16.msra.mxu0 %v1881_v52 }
  0xae   : > { %1365 = vmatprep.subr.bf16.mxu0 %v1889_v53 }
  0xb1   : > { %1366 = vmatpush1.bf16.msra.mxu0 %v1887_v54 }
  0xb2   : > { %1367 = vmatprep.subr.bf16.mxu0 %v1895_v55 }
  0xb5   : > { %1368 = vmatpush1.bf16.msra.mxu0 %v1893_v56 }
  0xb6   : > { %1369 = vmatprep.subr.bf16.mxu0 %v1901_v57 }
  0xb9   : > { %1370 = vmatpush1.bf16.msra.mxu0 %v1899_v58 }
  0xba   : > { %1371 = vmatprep.subr.bf16.mxu0 %v1907_v59 }
  0xbd   : > { %1372 = vmatpush1.bf16.msra.mxu0 %v1905_v60 }
  0xbe   : > { %1373 = vmatprep.subr.bf16.mxu0 %v1913_v61 }
  0xc1   : > { %1374 = vmatpush1.bf16.msra.mxu0 %v1911_v62  ;;  %v2006_v62 = vmov 1966171168  }
  0xc2   : > { %1375 = vmatprep.subr.bf16.mxu0 %v1919_v63  ;;  %v1443_v63 = vunpack.c.l.s4 %v2006_v62 }
  0xc5   : > { %1376 = vmatpush1.bf16.msra.mxu0 %v1917_v0  ;;  %v1445_v0 = vlaneseq }
  0xc6   : > { %1377 = vmatprep.subr.bf16.mxu0 %v1925_v1  ;;  %v1444_v1 = vunpack.c.0.s8 %v1443_v63 }
  0xc9   : > { %1378 = vmatpush1.bf16.msra.mxu0 %v1923_v2  ;;  %v1446_v2 = vshrl.u32 %v1445_v0, 7 }
  0xca   : > { %1379 = vmatprep.subr.bf16.mxu0 %v1934_v3 }
  0xcd   : > { %1380 = vmatpush1.bf16.msra.mxu0 %v1932_v4  ;;  %v1447_v4 = vsub.s32 %v1444_v1, %v1446_v2 }
  0xd0   : > { %1382 = vmatmul.mubr.bf16.vlgmr.msra.gmra.mrb[0].mxu0 %v1935_v5 }
 0x168   : > { %v1297_v6 = vpop.f32.mrb[0].mxu1 }
 0x169   : > { %v1299_v7 = vpop.f32.mrb[1].mxu1 }
 0x16a   : > { %v1301_v8 = vpop.f32.mrb[2].mxu1 }
 0x16b   : > { %v1303_v9 = vpop.f32.mrb[3].mxu1 }
 0x1a3   : > { %v1383_v10 = vpop.f32.mrb[0].mxu0 }
 0x1a4   : > { %v2409_v11 = vadd.f32 %v1383_v10, %v1297_v6  ;;  %v1385_v12 = vpop.f32.mrb[1].mxu0  ;;  %v1462_v10 = vsub.s32 0, %v1446_v2 }
 0x1a5   : > { %v2411_v13 = vadd.f32 %v1385_v12, %v1299_v7  ;;  %v1387_v14 = vpop.f32.mrb[2].mxu0  ;;  %v1466_v12 = vsub.s32 1, %v1446_v2 }
 0x1a6   : > { %v2413_v15 = vadd.f32 %v1387_v14, %v1301_v8  ;;  %v1389_v16 = vpop.f32.mrb[3].mxu0  ;;  %v1406_v18 = vmul.f32 %v2409_v11, %v2409_v11  ;;  %v1434_v8 = vld [vmem:[%s643_s10] sm:$0x3] }
 0x1a7   : > { %v2415_v17 = vadd.f32 %v1389_v16, %v1303_v9  ;;  %v1407_v21 = vmul.f32 %v2411_v13, %v2411_v13 }
 0x1a8   : > { %v1392_v19 = vadd.f32 %v2413_v15, %v2409_v11  ;;  %v1408_v20 = vmul.f32 %v2413_v15, %v2413_v15 }
 0x1a9   : > { %v1399_v22 = vadd.f32 %v2415_v17, %v2411_v13  ;;  %v1409_v23 = vmul.f32 %v2415_v17, %v2415_v17 }
 0x1aa   : > { %v1393_v24 = vrot.slane %v1392_v19, 4  ;;  %v1410_v25 = vadd.f32 %v1408_v20, %v1406_v18 }
 0x1ab   : > { %v1400_v26 = vrot.slane %v1399_v22, 4  ;;  %v1417_v27 = vadd.f32 %v1409_v23, %v1407_v21 }
 0x1ac   : > { %v1394_v28 = vadd.f32 %v1393_v24, %v1392_v19  ;;  %v1411_v29 = vrot.slane %v1410_v25, 4 }
 0x1ad   : > { %v1401_v30 = vadd.f32 %v1400_v26, %v1399_v22  ;;  %v1418_v31 = vrot.slane %v1417_v27, 4 }
 0x1ae   : > { %v1395_v32 = vrot.slane %v1394_v28, 2  ;;  %v1412_v33 = vadd.f32 %v1411_v29, %v1410_v25 }
 0x1af   : > { %v1402_v34 = vrot.slane %v1401_v30, 2  ;;  %v1419_v35 = vadd.f32 %v1418_v31, %v1417_v27  ;;  %v1458_v27 = vld [vmem:[%s648_s14] sm:$0x3] }
 0x1b0   : > { %v1396_v36 = vadd.f32 %v1395_v32, %v1394_v28  ;;  %v1413_v37 = vrot.slane %v1412_v33, 2 }
 0x1b1   : > { %v1403_v38 = vadd.f32 %v1402_v34, %v1401_v30  ;;  %v1420_v39 = vrot.slane %v1419_v35, 2 }
 0x1b2   : > { %v1397_v40 = vrot.slane %v1396_v36, 1  ;;  %v1414_v41 = vadd.f32 %v1413_v37, %v1412_v33 }
 0x1b3   : > { %v1404_v42 = vrot.slane %v1403_v38, 1  ;;  %v1421_v43 = vadd.f32 %v1420_v39, %v1419_v35 }
 0x1b4   : > { %v1398_v44 = vadd.f32 %v1397_v40, %v1396_v36  ;;  %v1415_v45 = vrot.slane %v1414_v41, 1 }
 0x1b5   : > { %v1405_v46 = vadd.f32 %v1404_v42, %v1403_v38  ;;  %v1422_v47 = vrot.slane %v1421_v43, 1 }
 0x1b6   : > { %v1416_v48 = vadd.f32 %v1415_v45, %v1414_v41  ;;  %v1424_v49 = vmul.f32 0.0625, %v1398_v44 }
 0x1b7   : > { %v1423_v50 = vadd.f32 %v1422_v47, %v1421_v43  ;;  %v1425_v51 = vmul.f32 0.0625, %v1405_v46 }
 0x1b8   : > { %v1426_v52 = vmul.f32 0.0625, %v1416_v48  ;;  %v1428_v53 = vmul.f32 %v1424_v49, %v1424_v49 }
 0x1b9   : > { %v1427_v54 = vmul.f32 0.0625, %v1423_v50  ;;  %v1429_v55 = vmul.f32 %v1425_v51, %v1425_v51 }
 0x1ba   : > { %v1430_v56 = vsub.f32 %v1426_v52, %v1428_v53 }
 0x1bb   : > { %v1431_v57 = vsub.f32 %v1427_v54, %v1429_v55 }
 0x1bc   : > { %v1432_v58 = vmax.f32 %v1430_v56, 0.0 }
 0x1bd   : > { %v1433_v59 = vmax.f32 %v1431_v57, 0.0 }
 0x1be   : > { %v1435_v60 = vadd.f32 1e-05, %v1432_v58 }
 0x1bf   : > { %v1436_v61 = vadd.f32 1e-05, %v1433_v59 }
 0x1c0   : > { %1938 = vrsqrt.f32 %v1435_v60 }
 0x1c1   : > { %1940 = vrsqrt.f32 %v1436_v61 }
 0x1ca   : > { %v1939_v3 = vpop.eup %1938 }
 0x1cb   : > { %v1941_v5 = vpop.eup %1940 }
 0x1cc   : > { %v1441_v6 = vcombine.low %v1939_v3, %v1941_v5 }
 0x1ce   : > { %v1448_v7 = vrot.slane %v1441_v6, %v1447_v4 }
 0x1d0   : > { %v1455_v9 = vrot.slane %v1448_v7, %v1447_v4 }
 0x1d2   : > { %v1457_v14 = vmul.f32 %v1455_v9, %v1434_v8 }
 0x1d4   : > { %v1463_v16 = vrot.slane %v1457_v14, %v1462_v10  ;;  %v1467_v18 = vrot.slane %v1457_v14, %v1466_v12 }
 0x1d6   : > { %v1470_v19 = vmul.f32 %v1463_v16, %v1424_v49  ;;  %v1471_v20 = vmul.f32 %v1467_v18, %v1425_v51  ;;  %v1491_v21 = vmul.f32 %v2409_v11, %v1463_v16  ;;  %v1492_v22 = vmul.f32 %v2411_v13, %v1467_v18 }
 0x1d7   : > { %v1493_v23 = vmul.f32 %v2413_v15, %v1463_v16  ;;  %v1494_v24 = vmul.f32 %v2415_v17, %v1467_v18 }
 0x1d8   : > { %v1474_v25 = vcombine.low %v1470_v19, %v1471_v20 }
 0x1da   : > { %v1481_v26 = vrot.slane %v1474_v25, %v1447_v4 }
 0x1dc   : > { %v1488_v28 = vrot.slane %v1481_v26, %v1447_v4 }
 0x1de   : > { %v1490_v29 = vsub.f32 %v1458_v27, %v1488_v28 }
 0x1e0   : > { %v1499_v11 = vrot.slane %v1490_v29, %v1462_v10  ;;  %v1503_v13 = vrot.slane %v1490_v29, %v1466_v12 }
 0x1e2   : > { %v1506_v15 = vadd.f32 %v1499_v11, %v1491_v21  ;;  %v1507_v17 = vadd.f32 %v1503_v13, %v1492_v22  ;;  %v1508_v30 = vadd.f32 %v1499_v11, %v1493_v23  ;;  %v1509_v31 = vadd.f32 %v1503_v13, %v1494_v24 }
 0x1e4   : > { %1510 = vst [vmem:[%s638_s20] sm:$0xff] %v1506_v15  ;;  %1511 = vst [vmem:[%s638_s20 + $0x8] sm:$0xff] %v1507_v17 }
 0x1e5   : > { %1512 = vst [vmem:[%s638_s20 + $0x10] sm:$0xff] %v1508_v30  ;;  %1513 = vst [vmem:[%s638_s20 + $0x18] sm:$0xff] %v1509_v31 }
 0x1e6   : > { %1955 = shalt.err (!%p1952_p7)
}
 0x1e7   : > { %s1956_s9 = scalar_lea.hbm %s2447_s29, 512  ;;  %s1960_s12 = scalar_lea.hbm %s2495_s4, 1024 }
 0x1e8   : > { %p1957_p10 = scmp.ne.s32.totalorder %s2447_s29, %s1956_s9  ;;  %p1961_p13 = scmp.lt.u32.totalorder %s2447_s29, %s2495_s4 }
 0x1e9   : > { %p1962_p0 = scmp.lt.u32.totalorder %s1960_s12, %s1956_s9  ;;  %p1964_p2 = scmp.lt.u32.totalorder %s1956_s9, %s2447_s29 }
 0x1ea   : > { %p1958_p11 = pnand %p1957_p10, %p2075_p6 }
 0x1eb   : > { %p1963_p1 = por %p1962_p0, %p1961_p13 }
 0x1ec   : > { %p1959_p12 = pneg %p1958_p11 }
 0x1ed   : > { %p1965_p3 = por %p1964_p2, %p1963_p1 }
 0x1ef   : > { %p1966_p4 = pnand %p1965_p3, %p1959_p12 }
 0x1f1   : > { %1969 = shalt.err (!%p1966_p4)
}
 0x1f2   : > { %s2008_s20 = smov 256   ;;  %s2009_s23 = smov 512  }
 0x1f3   : > { %s2010_s27 = smov 16  }
 0x1f4   : > { %1742 = dma.vmem_to_hbm [thread:$0]  (%p2075_p6), %s2442_s22, 512, %s2447_s29, %s1515_s19, %s2008_s20, %s2009_s23, %s2010_s27  }
 0x1f5 PF: > { %s1543_s28 = sand.u32 1, %s1992_s15   ;;  %p1745_p5 = pnand %p1616_p9, %p2079_p8 }
 0x1f6   : > { %s1544_s30 = scalar_lea.sflag [#allocation4], %s1543_s28 }
 0x1f7   : > { %1987 = dma.done.wait (!%p1745_p5), %s1544_s30, 512  }
 0x1f8   : > { %1989 = vsyncadd (!%p1745_p5), %s1544_s30, 4294966784  ;;  %p14_p7 = scmp.ge.s32.totalorder %s2061_s21, 4   ;;  %s2498_s15 = smov %s1996_s16 }
 0x1f9   : > { %s2499_s16 = smov %s2000_s17  ;;  %s2500_s17 = smov %s2073_s24 }
 0x1fa   : > { %s2501_s18 = smov %s2061_s21  ;;  %16 = sbr.rel (!%p14_p7) target bundleno = 3 (0x3), region = 120 }
 0x201   :  { %1549 = vsyncpa [#allocation4], 1 }
 0x202   :  { %1551 = vsyncpa [#allocation4 + $0x1], 1 }

</bundles_post_ra>
